<compile_context>
chip_gen: v7x
topology: tpu7x:2x2x1
jax: 0.10.0
libtpu: 0.0.40
codegen_flags: <defaults>
</compile_context>

<pallas_src>
import functools

import jax
import jax.numpy as jnp
from jax import lax
from jax.experimental import pallas as pl
from jax.experimental.pallas import tpu as pltpu


def _pick_tile_n(n):
    # Largest power-of-two tile that divides N while keeping >= 2 grid steps
    # (so both v7x TensorCores get work).  TODO(synk): tune per generation.
    for t in (8, 4, 2, 1):
        if n % t == 0 and n // t >= 2:
            return t
    return 1


# ---------------------------------------------------------------------------
# Kernel 1: fused resblock  (conv3x3 -> PReLU -> conv3x3 -> PReLU)
#           + per-image channel-wise spatial sum + compact NCHW crop.
# ---------------------------------------------------------------------------
def _fused_resblock_kernel(x_ref, w1_ref, b1_ref, a1_ref,
                           w2_ref, b2_ref, a2_ref, m_ref,
                           res_ref, pool_ref, *, H, W, Hp, Wp, TILE_N):
    # x_ref   : (TILE_N, C, E)   extended flat canvases, bf16
    # w*_ref  : (C, 9*C)         stacked weights, bf16, K-order = (ky, kx, c_in)
    # b*,a*   : (C, 1)           bias / PReLU slope, f32
    # m_ref   : (1, TILE_N*L)    1.0 on canvas interior, 0.0 on border (tiled)
    # res_ref : (TILE_N, C, H*W) conv2 output, compact NCHW layout, f32
    # pool_ref: (TILE_N, C, 1)   per-channel spatial sum of res
    C = b1_ref.shape[0]
    L = Hp * Wp
    P = Wp + 1

    mask = m_ref[...]                                          # (1, TILE_N*L)

    def conv_prelu(canvases, w_ref, b_ref, a_ref):
        # canvases: list of TILE_N (C, E) bf16 extended canvases.
        # im2col: 9 taps x TILE_N images, all static lane slices.
        cols = []
        for ky in range(3):
            for kx in range(3):
                off = ky * Wp + kx
                cols.append(jnp.concatenate(
                    [cv[:, off:off + L] for cv in canvases], axis=1))
        xs = jnp.concatenate(cols, axis=0)                     # (9C, TILE_N*L) bf16
        # Single MXU matmul, f32 accumulation.
        acc = jnp.dot(w_ref[...], xs,
                      preferred_element_type=jnp.float32)      # (C, TILE_N*L)
        acc = acc + b_ref[...]                                 # bias
        y = jnp.where(acc > 0, acc, a_ref[...] * acc)          # per-channel PReLU
        return y * mask                                        # re-zero canvas border

    # conv1 (+PReLU): cast to bf16 BEFORE building the 9 taps.
    x_imgs = [x_ref[n].astype(jnp.bfloat16) for n in range(TILE_N)]
    y1 = conv_prelu(x_imgs, w1_ref, b1_ref, a1_ref)            # (C, TILE_N*L) f32

    # Rebuild per-image extended canvases for conv2; h1 stays in VMEM as bf16.
    zpad = jnp.zeros((C, P), jnp.bfloat16)
    y1_bf = y1.astype(jnp.bfloat16)
    h1_imgs = [jnp.concatenate([zpad, y1_bf[:, n * L:(n + 1) * L], zpad], axis=1)
               for n in range(TILE_N)]                         # (C, E) each

    # conv2 (+PReLU)
    res = conv_prelu(h1_imgs, w2_ref, b2_ref, a2_ref)          # (C, TILE_N*L) f32

    # Per-image spatial sum (feeds SE pooling) + compact NCHW crop.
    for n in range(TILE_N):
        seg = res[:, n * L:(n + 1) * L]                        # (C, L)
        pool_ref[n] = jnp.sum(seg, axis=1, keepdims=True)      # (C, 1)
        rows = [seg[:, (r + 1) * Wp + 1:(r + 1) * Wp + 1 + W] for r in range(H)]
        res_ref[n] = jnp.concatenate(rows, axis=1)             # (C, H*W) lane-dense


def fused_resblock(x_ext, mask_tiled, w1, b1, a1, w2, b2, a2, *,
                   H, W, Hp, Wp, tile_n):
    N, C, E = x_ext.shape
    L = Hp * Wp
    HW = H * W
    kern = functools.partial(_fused_resblock_kernel,
                             H=H, W=W, Hp=Hp, Wp=Wp, TILE_N=tile_n)
    flops = int(2 * (2 * C * 9 * C * L) * N)                   # two matmuls per image
    bytes_accessed = int(N * C * E * 2 + N * C * HW * 4 + N * C * 4
                         + 2 * C * 9 * C * 2 + 4 * C * 4 + tile_n * L * 4)
    return pl.pallas_call(
        kern,
        out_shape=(jax.ShapeDtypeStruct((N, C, HW), jnp.float32),
                   jax.ShapeDtypeStruct((N, C, 1), jnp.float32)),
        grid=(N // tile_n,),
        in_specs=[
            pl.BlockSpec((tile_n, C, E), lambda n: (n, 0, 0)),
            pl.BlockSpec((C, 9 * C), lambda n: (0, 0)),        # constant -> resident
            pl.BlockSpec((C, 1), lambda n: (0, 0)),
            pl.BlockSpec((C, 1), lambda n: (0, 0)),
            pl.BlockSpec((C, 9 * C), lambda n: (0, 0)),
            pl.BlockSpec((C, 1), lambda n: (0, 0)),
            pl.BlockSpec((C, 1), lambda n: (0, 0)),
            pl.BlockSpec((1, tile_n * L), lambda n: (0, 0)),
        ],
        out_specs=(pl.BlockSpec((tile_n, C, HW), lambda n: (n, 0, 0)),
                   pl.BlockSpec((tile_n, C, 1), lambda n: (n, 0, 0))),
        compiler_params=pltpu.CompilerParams(
            dimension_semantics=("parallel",),
            vmem_limit_bytes=48 * 1024 * 1024),
        cost_estimate=pl.CostEstimate(flops=flops, transcendentals=0,
                                      bytes_accessed=bytes_accessed),
    )(x_ext, w1, b1, a1, w2, b2, a2, mask_tiled)


# ---------------------------------------------------------------------------
# Kernel 2: elementwise SE application  out = x + res * w   (compact layout)
# ---------------------------------------------------------------------------
def _se_apply_kernel(x_ref, res_ref, w_ref, o_ref):
    o_ref[...] = x_ref[...] + res_ref[...] * w_ref[...]


def se_apply(x_flat, res_flat, wgt, *, tile_n):
    N, C, HW = x_flat.shape
    return pl.pallas_call(
        _se_apply_kernel,
        out_shape=jax.ShapeDtypeStruct((N, C, HW), jnp.float32),
        grid=(N // tile_n,),
        in_specs=[pl.BlockSpec((tile_n, C, HW), lambda n: (n, 0, 0)),
                  pl.BlockSpec((tile_n, C, HW), lambda n: (n, 0, 0)),
                  pl.BlockSpec((tile_n, C, 1), lambda n: (n, 0, 0))],
        out_specs=pl.BlockSpec((tile_n, C, HW), lambda n: (n, 0, 0)),
        compiler_params=pltpu.CompilerParams(
            dimension_semantics=("parallel",),
            vmem_limit_bytes=48 * 1024 * 1024),
        cost_estimate=pl.CostEstimate(
            flops=int(2 * N * C * HW), transcendentals=0,
            bytes_accessed=int(3 * N * C * HW * 4 + N * C * 4)),
    )(x_flat, res_flat, wgt)


# ---------------------------------------------------------------------------
# Glue / full forward
# ---------------------------------------------------------------------------
def _stack_conv_weight(w_oihw):
    # (O, I, 3, 3) -> (O, ky, kx, I) -> (O, 9*I), bf16 for the MXU.
    O, I, KH, KW = w_oihw.shape
    return jnp.transpose(w_oihw, (0, 2, 3, 1)).reshape(O, KH * KW * I).astype(jnp.bfloat16)


def se_block_forward(params, x_nchw, down_nchw):
    N, C, H, W = x_nchw.shape
    Hp, Wp = H + 2, W + 2
    L, P = Hp * Wp, Wp + 1
    E = L + 2 * P
    tile_n = _pick_tile_n(N)

    # One-time layout glue (no transposes): spatial zero-pad, flatten HxW into
    # lanes, add the (Wp+1)-lane zero apron, ship to the conv kernel in bf16.
    xc = jnp.pad(x_nchw, ((0, 0), (0, 0), (1, 1), (1, 1))).reshape(N, C, L)
    x_ext = jnp.pad(xc, ((0, 0), (0, 0), (P, P))).astype(jnp.bfloat16)   # (N, C, E)

    mask = jnp.zeros((Hp, Wp), jnp.float32).at[1:-1, 1:-1].set(1.0).reshape(1, L)
    mask_tiled = jnp.tile(mask, (1, tile_n))                             # (1, tile_n*L)

    w1 = _stack_conv_weight(params["w1"])
    w2 = _stack_conv_weight(params["w2"])
    b1, a1 = params["b1"].reshape(C, 1), params["a1"].reshape(C, 1)
    b2, a2 = params["b2"].reshape(C, 1), params["a2"].reshape(C, 1)

    res_flat, pool_sum = fused_resblock(x_ext, mask_tiled, w1, b1, a1, w2, b2, a2,
                                        H=H, W=W, Hp=Hp, Wp=Wp, tile_n=tile_n)

    # Tiny SE excitation chain on (N, C)-sized tensors: plain JAX (per review).
    pooled = pool_sum.reshape(N, C) / float(H * W)                       # adaptive avg pool
    p = pooled @ params["w_pre"] + params["b_pre"]                       # 1x1 conv
    cat = jnp.concatenate([p, down_nchw.reshape(N, 2)], axis=1)
    hid = jax.nn.relu(cat @ params["w_se1"] + params["b_se1"])
    wgt = jax.nn.sigmoid(hid @ params["w_se2"] + params["b_se2"])        # (N, C)

    x_flat = x_nchw.reshape(N, C, H * W)
    out_flat = se_apply(x_flat, res_flat, wgt.reshape(N, C, 1), tile_n=tile_n)
    return out_flat.reshape(N, C, H, W), down_nchw


# Pure-JAX (f32) reference for numerical validation.
def reference_forward(params, x_nchw, down_nchw):
    def conv(h, w, b, a):
        y = lax.conv_general_dilated(
            h, w, (1, 1), "SAME",
            dimension_numbers=("NCHW", "OIHW", "NCHW")) + b[None, :, None, None]
        return jnp.where(y > 0, y, a[None, :, None, None] * y)

    h1 = conv(x_nchw, params["w1"], params["b1"], params["a1"])
    res = conv(h1, params["w2"], params["b2"], params["a2"])
    pooled = jnp.mean(res, axis=(2, 3))
    p = pooled @ params["w_pre"] + params["b_pre"]
    cat = jnp.concatenate([p, down_nchw.reshape(-1, 2)], axis=1)
    hid = jnp.maximum(cat @ params["w_se1"] + params["b_se1"], 0.0)
    wgt = jax.nn.sigmoid(hid @ params["w_se2"] + params["b_se2"])
    out = x_nchw + res * wgt[:, :, None, None]
    return out, down_nchw


def init_params(key, channels, r):
    Cr = channels // r
    ks = jax.random.split(key, 8)
    scale = 0.1
    return {
        # 3x3 convs stored in PyTorch OIHW layout (f32 master copy)
        "w1": scale * jax.random.normal(ks[0], (channels, channels, 3, 3), jnp.float32),
        "b1": scale * jax.random.normal(ks[1], (channels,), jnp.float32),
        "a1": 0.25 * jnp.ones((channels,), jnp.float32),     # PReLU default init
        "w2": scale * jax.random.normal(ks[2], (channels, channels, 3, 3), jnp.float32),
        "b2": scale * jax.random.normal(ks[3], (channels,), jnp.float32),
        "a2": 0.25 * jnp.ones((channels,), jnp.float32),
        # 1x1 convs stored as (Cin, Cout) matrices
        "w_pre": scale * jax.random.normal(ks[4], (channels, Cr), jnp.float32),
        "b_pre": scale * jax.random.normal(ks[5], (Cr,), jnp.float32),
        "w_se1": scale * jax.random.normal(ks[6], (Cr + 2, Cr), jnp.float32),
        "b_se1": jnp.zeros((Cr,), jnp.float32),
        "w_se2": scale * jax.random.normal(ks[7], (Cr, channels), jnp.float32),
        "b_se2": jnp.zeros((channels,), jnp.float32),
    }


if __name__ == "__main__":
    N, C, H, W, r = 4, 8, 16, 16, 4          # N=4 -> TILE_N=2, grid of 2 steps
    key = jax.random.PRNGKey(0)
    kx, kd, kp = jax.random.split(key, 3)
    x = jax.random.normal(kx, (N, C, H, W), jnp.float32)            # NCHW input
    down_factor = jax.random.normal(kd, (N, 2, 1, 1), jnp.float32)
    params = init_params(kp, C, r)

    fwd = jax.jit(se_block_forward)
    out, down_out = jax.block_until_ready(fwd(params, x, down_factor))
    ref_out, ref_down = reference_forward(params, x, down_factor)

    assert out.shape == (N, C, H, W) and down_out.shape == (N, 2, 1, 1)
    # bf16 MXU operands vs f32 reference -> relaxed tolerance (deliberate trade-off).
    assert jnp.allclose(out, ref_out, atol=5e-2, rtol=5e-2), "mismatch vs reference"
    assert jnp.allclose(down_out, ref_down)
    print("KERNEL_OK")
</pallas_src>

<mosaic_0001>
module attributes {stable_mosaic.version = 11 : i64} {
  func.func @_se_apply_kernel(%arg0: i32, %arg1: memref<2x8x256xf32, #tpu.memory_space<vmem>>, %arg2: memref<2x8x256xf32, #tpu.memory_space<vmem>>, %arg3: memref<2x8x1xf32, #tpu.memory_space<vmem>>, %arg4: memref<2x8x256xf32, #tpu.memory_space<vmem>>) attributes {dimension_semantics = [#tpu.dimension_semantics<parallel>], iteration_bounds = array<i64: 2>, scalar_prefetch = 0 : i64, scratch_operands = 0 : i64, tpu.core_type = #tpu.core_type<tc>, window_params = [{transform_indices = @transform_0, window_bounds = array<i64: 2, 8, 256>}, {transform_indices = @transform_1, window_bounds = array<i64: 2, 8, 256>}, {transform_indices = @transform_2, window_bounds = array<i64: 2, 8, 1>}, {transform_indices = @transform_3, window_bounds = array<i64: 2, 8, 256>}]} {
    %c0 = arith.constant 0 : index
    %c0_0 = arith.constant 0 : index
    %c0_1 = arith.constant 0 : index
    %0 = vector.load %arg1[%c0, %c0_0, %c0_1] : memref<2x8x256xf32, #tpu.memory_space<vmem>>, vector<2x8x256xf32>
    %c0_2 = arith.constant 0 : index
    %c0_3 = arith.constant 0 : index
    %c0_4 = arith.constant 0 : index
    %1 = vector.load %arg2[%c0_2, %c0_3, %c0_4] : memref<2x8x256xf32, #tpu.memory_space<vmem>>, vector<2x8x256xf32>
    %c0_5 = arith.constant 0 : index
    %c0_6 = arith.constant 0 : index
    %c0_7 = arith.constant 0 : index
    %2 = vector.load %arg3[%c0_5, %c0_6, %c0_7] : memref<2x8x1xf32, #tpu.memory_space<vmem>>, vector<2x8x1xf32>
    %3 = vector.broadcast %2 : vector<2x8x1xf32> to vector<2x8x256xf32>
    %4 = arith.mulf %1, %3 : vector<2x8x256xf32>
    %5 = arith.addf %0, %4 : vector<2x8x256xf32>
    %c0_8 = arith.constant 0 : index
    %c0_9 = arith.constant 0 : index
    %c0_10 = arith.constant 0 : index
    %6 = vector.load %arg4[%c0_8, %c0_9, %c0_10] : memref<2x8x256xf32, #tpu.memory_space<vmem>>, vector<2x8x256xf32>
    tpu.vector_store %arg4[%c0_8, %c0_9, %c0_10], %5 {strides = array<i32>} : memref<2x8x256xf32, #tpu.memory_space<vmem>>, vector<2x8x256xf32>,
    return
  }
  func.func @transform_0(%arg0: i32) -> (i32, i32, i32) {
    %c0_i32 = arith.constant 0 : i32
    %c0_i32_0 = arith.constant 0 : i32
    %c0_i32_1 = arith.constant 0 : i32
    return %arg0, %c0_i32, %c0_i32_0 : i32, i32, i32
  }
  func.func @transform_1(%arg0: i32) -> (i32, i32, i32) {
    %c0_i32 = arith.constant 0 : i32
    %c0_i32_0 = arith.constant 0 : i32
    %c0_i32_1 = arith.constant 0 : i32
    return %arg0, %c0_i32, %c0_i32_0 : i32, i32, i32
  }
  func.func @transform_2(%arg0: i32) -> (i32, i32, i32) {
    %c0_i32 = arith.constant 0 : i32
    %c0_i32_0 = arith.constant 0 : i32
    %c0_i32_1 = arith.constant 0 : i32
    return %arg0, %c0_i32, %c0_i32_0 : i32, i32, i32
  }
  func.func @transform_3(%arg0: i32) -> (i32, i32, i32) {
    %c0_i32 = arith.constant 0 : i32
    %c0_i32_0 = arith.constant 0 : i32
    %c0_i32_1 = arith.constant 0 : i32
    return %arg0, %c0_i32, %c0_i32_0 : i32, i32, i32
  }
}

module attributes {stable_mosaic.version = 11 : i64} {
  func.func @_fused_resblock_kernel(%arg0: i32, %arg1: memref<2x8x362xbf16, #tpu.memory_space<vmem>>, %arg2: memref<8x72xbf16, #tpu.memory_space<vmem>>, %arg3: memref<8x1xf32, #tpu.memory_space<vmem>>, %arg4: memref<8x1xf32, #tpu.memory_space<vmem>>, %arg5: memref<8x72xbf16, #tpu.memory_space<vmem>>, %arg6: memref<8x1xf32, #tpu.memory_space<vmem>>, %arg7: memref<8x1xf32, #tpu.memory_space<vmem>>, %arg8: memref<1x648xf32, #tpu.memory_space<vmem>>, %arg9: memref<2x8x256xf32, #tpu.memory_space<vmem>>, %arg10: memref<2x8x1xf32, #tpu.memory_space<vmem>>) attributes {dimension_semantics = [#tpu.dimension_semantics<parallel>], iteration_bounds = array<i64: 2>, scalar_prefetch = 0 : i64, scratch_operands = 0 : i64, tpu.core_type = #tpu.core_type<tc>, window_params = [{transform_indices = @transform_0, window_bounds = array<i64: 2, 8, 362>}, {pipeline_mode = #tpu.pipeline_mode<synchronous>, transform_indices = @transform_1, window_bounds = array<i64: 8, 72>}, {pipeline_mode = #tpu.pipeline_mode<synchronous>, transform_indices = @transform_2, window_bounds = array<i64: 8, 1>}, {pipeline_mode = #tpu.pipeline_mode<synchronous>, transform_indices = @transform_3, window_bounds = array<i64: 8, 1>}, {pipeline_mode = #tpu.pipeline_mode<synchronous>, transform_indices = @transform_4, window_bounds = array<i64: 8, 72>}, {pipeline_mode = #tpu.pipeline_mode<synchronous>, transform_indices = @transform_5, window_bounds = array<i64: 8, 1>}, {pipeline_mode = #tpu.pipeline_mode<synchronous>, transform_indices = @transform_6, window_bounds = array<i64: 8, 1>}, {pipeline_mode = #tpu.pipeline_mode<synchronous>, transform_indices = @transform_7, window_bounds = array<i64: 1, 648>}, {transform_indices = @transform_8, window_bounds = array<i64: 2, 8, 256>}, {transform_indices = @transform_9, window_bounds = array<i64: 2, 8, 1>}]} {
    %c0 = arith.constant 0 : index
    %c0_0 = arith.constant 0 : index
    %0 = vector.load %arg8[%c0, %c0_0] : memref<1x648xf32, #tpu.memory_space<vmem>>, vector<1x648xf32>
    %c0_1 = arith.constant 0 : index
    %c0_2 = arith.constant 0 : index
    %c0_3 = arith.constant 0 : index
    %1 = vector.load %arg1[%c0_1, %c0_2, %c0_3] : memref<2x8x362xbf16, #tpu.memory_space<vmem>>, vector<1x8x362xbf16>
    %2 = vector.shape_cast %1 : vector<1x8x362xbf16> to vector<8x362xbf16>
    %c1 = arith.constant 1 : index
    %c0_4 = arith.constant 0 : index
    %c0_5 = arith.constant 0 : index
    %3 = vector.load %arg1[%c1, %c0_4, %c0_5] : memref<2x8x362xbf16, #tpu.memory_space<vmem>>, vector<1x8x362xbf16>
    %4 = vector.shape_cast %3 : vector<1x8x362xbf16> to vector<8x362xbf16>
    %5 = vector.extract_strided_slice %2 {offsets = [0, 0], sizes = [8, 324], strides = [1, 1]} : vector<8x362xbf16> to vector<8x324xbf16>
    %6 = vector.extract_strided_slice %4 {offsets = [0, 0], sizes = [8, 324], strides = [1, 1]} : vector<8x362xbf16> to vector<8x324xbf16>
    %7 = tpu.concatenate %5, %6 in 1 : vector<8x324xbf16>, vector<8x324xbf16> -> vector<8x648xbf16>
    %8 = vector.extract_strided_slice %2 {offsets = [0, 1], sizes = [8, 324], strides = [1, 1]} : vector<8x362xbf16> to vector<8x324xbf16>
    %9 = vector.extract_strided_slice %4 {offsets = [0, 1], sizes = [8, 324], strides = [1, 1]} : vector<8x362xbf16> to vector<8x324xbf16>
    %10 = tpu.concatenate %8, %9 in 1 : vector<8x324xbf16>, vector<8x324xbf16> -> vector<8x648xbf16>
    %11 = vector.extract_strided_slice %2 {offsets = [0, 2], sizes = [8, 324], strides = [1, 1]} : vector<8x362xbf16> to vector<8x324xbf16>
    %12 = vector.extract_strided_slice %4 {offsets = [0, 2], sizes = [8, 324], strides = [1, 1]} : vector<8x362xbf16> to vector<8x324xbf16>
    %13 = tpu.concatenate %11, %12 in 1 : vector<8x324xbf16>, vector<8x324xbf16> -> vector<8x648xbf16>
    %14 = vector.extract_strided_slice %2 {offsets = [0, 18], sizes = [8, 324], strides = [1, 1]} : vector<8x362xbf16> to vector<8x324xbf16>
    %15 = vector.extract_strided_slice %4 {offsets = [0, 18], sizes = [8, 324], strides = [1, 1]} : vector<8x362xbf16> to vector<8x324xbf16>
    %16 = tpu.concatenate %14, %15 in 1 : vector<8x324xbf16>, vector<8x324xbf16> -> vector<8x648xbf16>
    %17 = vector.extract_strided_slice %2 {offsets = [0, 19], sizes = [8, 324], strides = [1, 1]} : vector<8x362xbf16> to vector<8x324xbf16>
    %18 = vector.extract_strided_slice %4 {offsets = [0, 19], sizes = [8, 324], strides = [1, 1]} : vector<8x362xbf16> to vector<8x324xbf16>
    %19 = tpu.concatenate %17, %18 in 1 : vector<8x324xbf16>, vector<8x324xbf16> -> vector<8x648xbf16>
    %20 = vector.extract_strided_slice %2 {offsets = [0, 20], sizes = [8, 324], strides = [1, 1]} : vector<8x362xbf16> to vector<8x324xbf16>
    %21 = vector.extract_strided_slice %4 {offsets = [0, 20], sizes = [8, 324], strides = [1, 1]} : vector<8x362xbf16> to vector<8x324xbf16>
    %22 = tpu.concatenate %20, %21 in 1 : vector<8x324xbf16>, vector<8x324xbf16> -> vector<8x648xbf16>
    %23 = vector.extract_strided_slice %2 {offsets = [0, 36], sizes = [8, 324], strides = [1, 1]} : vector<8x362xbf16> to vector<8x324xbf16>
    %24 = vector.extract_strided_slice %4 {offsets = [0, 36], sizes = [8, 324], strides = [1, 1]} : vector<8x362xbf16> to vector<8x324xbf16>
    %25 = tpu.concatenate %23, %24 in 1 : vector<8x324xbf16>, vector<8x324xbf16> -> vector<8x648xbf16>
    %26 = vector.extract_strided_slice %2 {offsets = [0, 37], sizes = [8, 324], strides = [1, 1]} : vector<8x362xbf16> to vector<8x324xbf16>
    %27 = vector.extract_strided_slice %4 {offsets = [0, 37], sizes = [8, 324], strides = [1, 1]} : vector<8x362xbf16> to vector<8x324xbf16>
    %28 = tpu.concatenate %26, %27 in 1 : vector<8x324xbf16>, vector<8x324xbf16> -> vector<8x648xbf16>
    %29 = vector.extract_strided_slice %2 {offsets = [0, 38], sizes = [8, 324], strides = [1, 1]} : vector<8x362xbf16> to vector<8x324xbf16>
    %30 = vector.extract_strided_slice %4 {offsets = [0, 38], sizes = [8, 324], strides = [1, 1]} : vector<8x362xbf16> to vector<8x324xbf16>
    %31 = tpu.concatenate %29, %30 in 1 : vector<8x324xbf16>, vector<8x324xbf16> -> vector<8x648xbf16>
    %32 = tpu.concatenate %7, %10, %13, %16, %19, %22, %25, %28, %31 in 0 : vector<8x648xbf16>, vector<8x648xbf16>, vector<8x648xbf16>, vector<8x648xbf16>, vector<8x648xbf16>, vector<8x648xbf16>, vector<8x648xbf16>, vector<8x648xbf16>, vector<8x648xbf16> -> vector<72x648xbf16>
    %c0_6 = arith.constant 0 : index
    %c0_7 = arith.constant 0 : index
    %33 = vector.load %arg2[%c0_6, %c0_7] : memref<8x72xbf16, #tpu.memory_space<vmem>>, vector<8x72xbf16>
    %cst = arith.constant dense<0.000000e+00> : vector<8x648xf32>
    %34 = tpu.matmul %33, %32, %cst {dimension_numbers = #tpu.dot_dimension_numbers<[1], [0], [0], [1], [0, 0, 1, 1], [], []>} : vector<8x72xbf16>, vector<72x648xbf16>, vector<8x648xf32> -> vector<8x648xf32>
    %c0_8 = arith.constant 0 : index
    %c0_9 = arith.constant 0 : index
    %35 = vector.load %arg3[%c0_8, %c0_9] : memref<8x1xf32, #tpu.memory_space<vmem>>, vector<8x1xf32>
    %36 = vector.broadcast %35 : vector<8x1xf32> to vector<8x648xf32>
    %37 = arith.addf %34, %36 : vector<8x648xf32>
    %cst_10 = arith.constant 0.000000e+00 : f32
    %38 = vector.broadcast %cst_10 : f32 to vector<8x648xf32>
    %39 = arith.cmpf ogt, %37, %38 : vector<8x648xf32>
    %c0_11 = arith.constant 0 : index
    %c0_12 = arith.constant 0 : index
    %40 = vector.load %arg4[%c0_11, %c0_12] : memref<8x1xf32, #tpu.memory_space<vmem>>, vector<8x1xf32>
    %41 = vector.broadcast %40 : vector<8x1xf32> to vector<8x648xf32>
    %42 = arith.mulf %41, %37 : vector<8x648xf32>
    %43 = arith.select %39, %37, %42 : vector<8x648xi1>, vector<8x648xf32>
    %44 = vector.broadcast %0 : vector<1x648xf32> to vector<8x648xf32>
    %45 = arith.mulf %43, %44 : vector<8x648xf32>
    %cst_13 = arith.constant 0.000000e+00 : bf16
    %46 = vector.broadcast %cst_13 : bf16 to vector<8x19xbf16>
    %47 = arith.truncf %45 : vector<8x648xf32> to vector<8x648xbf16>
    %48 = vector.extract_strided_slice %47 {offsets = [0, 0], sizes = [8, 324], strides = [1, 1]} : vector<8x648xbf16> to vector<8x324xbf16>
    %49 = tpu.concatenate %46, %48, %46 in 1 : vector<8x19xbf16>, vector<8x324xbf16>, vector<8x19xbf16> -> vector<8x362xbf16>
    %50 = vector.extract_strided_slice %47 {offsets = [0, 324], sizes = [8, 324], strides = [1, 1]} : vector<8x648xbf16> to vector<8x324xbf16>
    %51 = tpu.concatenate %46, %50, %46 in 1 : vector<8x19xbf16>, vector<8x324xbf16>, vector<8x19xbf16> -> vector<8x362xbf16>
    %52 = vector.extract_strided_slice %49 {offsets = [0, 0], sizes = [8, 324], strides = [1, 1]} : vector<8x362xbf16> to vector<8x324xbf16>
    %53 = vector.extract_strided_slice %51 {offsets = [0, 0], sizes = [8, 324], strides = [1, 1]} : vector<8x362xbf16> to vector<8x324xbf16>
    %54 = tpu.concatenate %52, %53 in 1 : vector<8x324xbf16>, vector<8x324xbf16> -> vector<8x648xbf16>
    %55 = vector.extract_strided_slice %49 {offsets = [0, 1], sizes = [8, 324], strides = [1, 1]} : vector<8x362xbf16> to vector<8x324xbf16>
    %56 = vector.extract_strided_slice %51 {offsets = [0, 1], sizes = [8, 324], strides = [1, 1]} : vector<8x362xbf16> to vector<8x324xbf16>
    %57 = tpu.concatenate %55, %56 in 1 : vector<8x324xbf16>, vector<8x324xbf16> -> vector<8x648xbf16>
    %58 = vector.extract_strided_slice %49 {offsets = [0, 2], sizes = [8, 324], strides = [1, 1]} : vector<8x362xbf16> to vector<8x324xbf16>
    %59 = vector.extract_strided_slice %51 {offsets = [0, 2], sizes = [8, 324], strides = [1, 1]} : vector<8x362xbf16> to vector<8x324xbf16>
    %60 = tpu.concatenate %58, %59 in 1 : vector<8x324xbf16>, vector<8x324xbf16> -> vector<8x648xbf16>
    %61 = vector.extract_strided_slice %49 {offsets = [0, 18], sizes = [8, 324], strides = [1, 1]} : vector<8x362xbf16> to vector<8x324xbf16>
    %62 = vector.extract_strided_slice %51 {offsets = [0, 18], sizes = [8, 324], strides = [1, 1]} : vector<8x362xbf16> to vector<8x324xbf16>
    %63 = tpu.concatenate %61, %62 in 1 : vector<8x324xbf16>, vector<8x324xbf16> -> vector<8x648xbf16>
    %64 = vector.extract_strided_slice %49 {offsets = [0, 19], sizes = [8, 324], strides = [1, 1]} : vector<8x362xbf16> to vector<8x324xbf16>
    %65 = vector.extract_strided_slice %51 {offsets = [0, 19], sizes = [8, 324], strides = [1, 1]} : vector<8x362xbf16> to vector<8x324xbf16>
    %66 = tpu.concatenate %64, %65 in 1 : vector<8x324xbf16>, vector<8x324xbf16> -> vector<8x648xbf16>
    %67 = vector.extract_strided_slice %49 {offsets = [0, 20], sizes = [8, 324], strides = [1, 1]} : vector<8x362xbf16> to vector<8x324xbf16>
    %68 = vector.extract_strided_slice %51 {offsets = [0, 20], sizes = [8, 324], strides = [1, 1]} : vector<8x362xbf16> to vector<8x324xbf16>
    %69 = tpu.concatenate %67, %68 in 1 : vector<8x324xbf16>, vector<8x324xbf16> -> vector<8x648xbf16>
    %70 = vector.extract_strided_slice %49 {offsets = [0, 36], sizes = [8, 324], strides = [1, 1]} : vector<8x362xbf16> to vector<8x324xbf16>
    %71 = vector.extract_strided_slice %51 {offsets = [0, 36], sizes = [8, 324], strides = [1, 1]} : vector<8x362xbf16> to vector<8x324xbf16>
    %72 = tpu.concatenate %70, %71 in 1 : vector<8x324xbf16>, vector<8x324xbf16> -> vector<8x648xbf16>
    %73 = vector.extract_strided_slice %49 {offsets = [0, 37], sizes = [8, 324], strides = [1, 1]} : vector<8x362xbf16> to vector<8x324xbf16>
    %74 = vector.extract_strided_slice %51 {offsets = [0, 37], sizes = [8, 324], strides = [1, 1]} : vector<8x362xbf16> to vector<8x324xbf16>
    %75 = tpu.concatenate %73, %74 in 1 : vector<8x324xbf16>, vector<8x324xbf16> -> vector<8x648xbf16>
    %76 = vector.extract_strided_slice %49 {offsets = [0, 38], sizes = [8, 324], strides = [1, 1]} : vector<8x362xbf16> to vector<8x324xbf16>
    %77 = vector.extract_strided_slice %51 {offsets = [0, 38], sizes = [8, 324], strides = [1, 1]} : vector<8x362xbf16> to vector<8x324xbf16>
    %78 = tpu.concatenate %76, %77 in 1 : vector<8x324xbf16>, vector<8x324xbf16> -> vector<8x648xbf16>
    %79 = tpu.concatenate %54, %57, %60, %63, %66, %69, %72, %75, %78 in 0 : vector<8x648xbf16>, vector<8x648xbf16>, vector<8x648xbf16>, vector<8x648xbf16>, vector<8x648xbf16>, vector<8x648xbf16>, vector<8x648xbf16>, vector<8x648xbf16>, vector<8x648xbf16> -> vector<72x648xbf16>
    %c0_14 = arith.constant 0 : index
    %c0_15 = arith.constant 0 : index
    %80 = vector.load %arg5[%c0_14, %c0_15] : memref<8x72xbf16, #tpu.memory_space<vmem>>, vector<8x72xbf16>
    %cst_16 = arith.constant dense<0.000000e+00> : vector<8x648xf32>
    %81 = tpu.matmul %80, %79, %cst_16 {dimension_numbers = #tpu.dot_dimension_numbers<[1], [0], [0], [1], [0, 0, 1, 1], [], []>} : vector<8x72xbf16>, vector<72x648xbf16>, vector<8x648xf32> -> vector<8x648xf32>
    %c0_17 = arith.constant 0 : index
    %c0_18 = arith.constant 0 : index
    %82 = vector.load %arg6[%c0_17, %c0_18] : memref<8x1xf32, #tpu.memory_space<vmem>>, vector<8x1xf32>
    %83 = vector.broadcast %82 : vector<8x1xf32> to vector<8x648xf32>
    %84 = arith.addf %81, %83 : vector<8x648xf32>
    %cst_19 = arith.constant 0.000000e+00 : f32
    %85 = vector.broadcast %cst_19 : f32 to vector<8x648xf32>
    %86 = arith.cmpf ogt, %84, %85 : vector<8x648xf32>
    %c0_20 = arith.constant 0 : index
    %c0_21 = arith.constant 0 : index
    %87 = vector.load %arg7[%c0_20, %c0_21] : memref<8x1xf32, #tpu.memory_space<vmem>>, vector<8x1xf32>
    %88 = vector.broadcast %87 : vector<8x1xf32> to vector<8x648xf32>
    %89 = arith.mulf %88, %84 : vector<8x648xf32>
    %90 = arith.select %86, %84, %89 : vector<8x648xi1>, vector<8x648xf32>
    %91 = vector.broadcast %0 : vector<1x648xf32> to vector<8x648xf32>
    %92 = arith.mulf %90, %91 : vector<8x648xf32>
    %93 = vector.extract_strided_slice %92 {offsets = [0, 0], sizes = [8, 324], strides = [1, 1]} : vector<8x648xf32> to vector<8x324xf32>
    %cst_22 = arith.constant dense<0.000000e+00> : vector<8xf32>
    %94 = vector.multi_reduction <add>, %93, %cst_22 [1] : vector<8x324xf32> to vector<8xf32>
    %95 = vector.shape_cast %94 : vector<8xf32> to vector<8x1xf32>
    %c0_23 = arith.constant 0 : index
    %c0_24 = arith.constant 0 : index
    %c0_25 = arith.constant 0 : index
    %96 = vector.load %arg10[%c0_23, %c0_24, %c0_25] : memref<2x8x1xf32, #tpu.memory_space<vmem>>, vector<1x8x1xf32>
    %97 = vector.shape_cast %96 : vector<1x8x1xf32> to vector<8x1xf32>
    %98 = vector.shape_cast %95 : vector<8x1xf32> to vector<1x8x1xf32>
    tpu.vector_store %arg10[%c0_23, %c0_24, %c0_25], %98 {strides = array<i32>} : memref<2x8x1xf32, #tpu.memory_space<vmem>>, vector<1x8x1xf32>,
    %99 = vector.extract_strided_slice %93 {offsets = [0, 19], sizes = [8, 16], strides = [1, 1]} : vector<8x324xf32> to vector<8x16xf32>
    %100 = vector.extract_strided_slice %93 {offsets = [0, 37], sizes = [8, 16], strides = [1, 1]} : vector<8x324xf32> to vector<8x16xf32>
    %101 = vector.extract_strided_slice %93 {offsets = [0, 55], sizes = [8, 16], strides = [1, 1]} : vector<8x324xf32> to vector<8x16xf32>
    %102 = vector.extract_strided_slice %93 {offsets = [0, 73], sizes = [8, 16], strides = [1, 1]} : vector<8x324xf32> to vector<8x16xf32>
    %103 = vector.extract_strided_slice %93 {offsets = [0, 91], sizes = [8, 16], strides = [1, 1]} : vector<8x324xf32> to vector<8x16xf32>
    %104 = vector.extract_strided_slice %93 {offsets = [0, 109], sizes = [8, 16], strides = [1, 1]} : vector<8x324xf32> to vector<8x16xf32>
    %105 = vector.extract_strided_slice %93 {offsets = [0, 127], sizes = [8, 16], strides = [1, 1]} : vector<8x324xf32> to vector<8x16xf32>
    %106 = vector.extract_strided_slice %93 {offsets = [0, 145], sizes = [8, 16], strides = [1, 1]} : vector<8x324xf32> to vector<8x16xf32>
    %107 = vector.extract_strided_slice %93 {offsets = [0, 163], sizes = [8, 16], strides = [1, 1]} : vector<8x324xf32> to vector<8x16xf32>
    %108 = vector.extract_strided_slice %93 {offsets = [0, 181], sizes = [8, 16], strides = [1, 1]} : vector<8x324xf32> to vector<8x16xf32>
    %109 = vector.extract_strided_slice %93 {offsets = [0, 199], sizes = [8, 16], strides = [1, 1]} : vector<8x324xf32> to vector<8x16xf32>
    %110 = vector.extract_strided_slice %93 {offsets = [0, 217], sizes = [8, 16], strides = [1, 1]} : vector<8x324xf32> to vector<8x16xf32>
    %111 = vector.extract_strided_slice %93 {offsets = [0, 235], sizes = [8, 16], strides = [1, 1]} : vector<8x324xf32> to vector<8x16xf32>
    %112 = vector.extract_strided_slice %93 {offsets = [0, 253], sizes = [8, 16], strides = [1, 1]} : vector<8x324xf32> to vector<8x16xf32>
    %113 = vector.extract_strided_slice %93 {offsets = [0, 271], sizes = [8, 16], strides = [1, 1]} : vector<8x324xf32> to vector<8x16xf32>
    %114 = vector.extract_strided_slice %93 {offsets = [0, 289], sizes = [8, 16], strides = [1, 1]} : vector<8x324xf32> to vector<8x16xf32>
    %115 = tpu.concatenate %99, %100, %101, %102, %103, %104, %105, %106, %107, %108, %109, %110, %111, %112, %113, %114 in 1 : vector<8x16xf32>, vector<8x16xf32>, vector<8x16xf32>, vector<8x16xf32>, vector<8x16xf32>, vector<8x16xf32>, vector<8x16xf32>, vector<8x16xf32>, vector<8x16xf32>, vector<8x16xf32>, vector<8x16xf32>, vector<8x16xf32>, vector<8x16xf32>, vector<8x16xf32>, vector<8x16xf32>, vector<8x16xf32> -> vector<8x256xf32>
    %c0_26 = arith.constant 0 : index
    %c0_27 = arith.constant 0 : index
    %c0_28 = arith.constant 0 : index
    %116 = vector.load %arg9[%c0_26, %c0_27, %c0_28] : memref<2x8x256xf32, #tpu.memory_space<vmem>>, vector<1x8x256xf32>
    %117 = vector.shape_cast %116 : vector<1x8x256xf32> to vector<8x256xf32>
    %118 = vector.shape_cast %115 : vector<8x256xf32> to vector<1x8x256xf32>
    tpu.vector_store %arg9[%c0_26, %c0_27, %c0_28], %118 {strides = array<i32>} : memref<2x8x256xf32, #tpu.memory_space<vmem>>, vector<1x8x256xf32>,
    %119 = vector.extract_strided_slice %92 {offsets = [0, 324], sizes = [8, 324], strides = [1, 1]} : vector<8x648xf32> to vector<8x324xf32>
    %cst_29 = arith.constant dense<0.000000e+00> : vector<8xf32>
    %120 = vector.multi_reduction <add>, %119, %cst_29 [1] : vector<8x324xf32> to vector<8xf32>
    %121 = vector.shape_cast %120 : vector<8xf32> to vector<8x1xf32>
    %c1_30 = arith.constant 1 : index
    %c0_31 = arith.constant 0 : index
    %c0_32 = arith.constant 0 : index
    %122 = vector.load %arg10[%c1_30, %c0_31, %c0_32] : memref<2x8x1xf32, #tpu.memory_space<vmem>>, vector<1x8x1xf32>
    %123 = vector.shape_cast %122 : vector<1x8x1xf32> to vector<8x1xf32>
    %124 = vector.shape_cast %121 : vector<8x1xf32> to vector<1x8x1xf32>
    tpu.vector_store %arg10[%c1_30, %c0_31, %c0_32], %124 {strides = array<i32>} : memref<2x8x1xf32, #tpu.memory_space<vmem>>, vector<1x8x1xf32>,
    %125 = vector.extract_strided_slice %119 {offsets = [0, 19], sizes = [8, 16], strides = [1, 1]} : vector<8x324xf32> to vector<8x16xf32>
    %126 = vector.extract_strided_slice %119 {offsets = [0, 37], sizes = [8, 16], strides = [1, 1]} : vector<8x324xf32> to vector<8x16xf32>
    %127 = vector.extract_strided_slice %119 {offsets = [0, 55], sizes = [8, 16], strides = [1, 1]} : vector<8x324xf32> to vector<8x16xf32>
    %128 = vector.extract_strided_slice %119 {offsets = [0, 73], sizes = [8, 16], strides = [1, 1]} : vector<8x324xf32> to vector<8x16xf32>
    %129 = vector.extract_strided_slice %119 {offsets = [0, 91], sizes = [8, 16], strides = [1, 1]} : vector<8x324xf32> to vector<8x16xf32>
    %130 = vector.extract_strided_slice %119 {offsets = [0, 109], sizes = [8, 16], strides = [1, 1]} : vector<8x324xf32> to vector<8x16xf32>
    %131 = vector.extract_strided_slice %119 {offsets = [0, 127], sizes = [8, 16], strides = [1, 1]} : vector<8x324xf32> to vector<8x16xf32>
    %132 = vector.extract_strided_slice %119 {offsets = [0, 145], sizes = [8, 16], strides = [1, 1]} : vector<8x324xf32> to vector<8x16xf32>
    %133 = vector.extract_strided_slice %119 {offsets = [0, 163], sizes = [8, 16], strides = [1, 1]} : vector<8x324xf32> to vector<8x16xf32>
    %134 = vector.extract_strided_slice %119 {offsets = [0, 181], sizes = [8, 16], strides = [1, 1]} : vector<8x324xf32> to vector<8x16xf32>
    %135 = vector.extract_strided_slice %119 {offsets = [0, 199], sizes = [8, 16], strides = [1, 1]} : vector<8x324xf32> to vector<8x16xf32>
    %136 = vector.extract_strided_slice %119 {offsets = [0, 217], sizes = [8, 16], strides = [1, 1]} : vector<8x324xf32> to vector<8x16xf32>
    %137 = vector.extract_strided_slice %119 {offsets = [0, 235], sizes = [8, 16], strides = [1, 1]} : vector<8x324xf32> to vector<8x16xf32>
    %138 = vector.extract_strided_slice %119 {offsets = [0, 253], sizes = [8, 16], strides = [1, 1]} : vector<8x324xf32> to vector<8x16xf32>
    %139 = vector.extract_strided_slice %119 {offsets = [0, 271], sizes = [8, 16], strides = [1, 1]} : vector<8x324xf32> to vector<8x16xf32>
    %140 = vector.extract_strided_slice %119 {offsets = [0, 289], sizes = [8, 16], strides = [1, 1]} : vector<8x324xf32> to vector<8x16xf32>
    %141 = tpu.concatenate %125, %126, %127, %128, %129, %130, %131, %132, %133, %134, %135, %136, %137, %138, %139, %140 in 1 : vector<8x16xf32>, vector<8x16xf32>, vector<8x16xf32>, vector<8x16xf32>, vector<8x16xf32>, vector<8x16xf32>, vector<8x16xf32>, vector<8x16xf32>, vector<8x16xf32>, vector<8x16xf32>, vector<8x16xf32>, vector<8x16xf32>, vector<8x16xf32>, vector<8x16xf32>, vector<8x16xf32>, vector<8x16xf32> -> vector<8x256xf32>
    %c1_33 = arith.constant 1 : index
    %c0_34 = arith.constant 0 : index
    %c0_35 = arith.constant 0 : index
    %142 = vector.load %arg9[%c1_33, %c0_34, %c0_35] : memref<2x8x256xf32, #tpu.memory_space<vmem>>, vector<1x8x256xf32>
    %143 = vector.shape_cast %142 : vector<1x8x256xf32> to vector<8x256xf32>
    %144 = vector.shape_cast %141 : vector<8x256xf32> to vector<1x8x256xf32>
    tpu.vector_store %arg9[%c1_33, %c0_34, %c0_35], %144 {strides = array<i32>} : memref<2x8x256xf32, #tpu.memory_space<vmem>>, vector<1x8x256xf32>,
    return
  }
  func.func @transform_0(%arg0: i32) -> (i32, i32, i32) {
    %c0_i32 = arith.constant 0 : i32
    %c0_i32_0 = arith.constant 0 : i32
    %c0_i32_1 = arith.constant 0 : i32
    return %arg0, %c0_i32, %c0_i32_0 : i32, i32, i32
  }
  func.func @transform_1(%arg0: i32) -> (i32, i32) {
    %c0_i32 = arith.constant 0 : i32
    %c0_i32_0 = arith.constant 0 : i32
    %c0_i32_1 = arith.constant 0 : i32
    return %c0_i32, %c0_i32_0 : i32, i32
  }
  func.func @transform_2(%arg0: i32) -> (i32, i32) {
    %c0_i32 = arith.constant 0 : i32
    %c0_i32_0 = arith.constant 0 : i32
    %c0_i32_1 = arith.constant 0 : i32
    return %c0_i32, %c0_i32_0 : i32, i32
  }
  func.func @transform_3(%arg0: i32) -> (i32, i32) {
    %c0_i32 = arith.constant 0 : i32
    %c0_i32_0 = arith.constant 0 : i32
    %c0_i32_1 = arith.constant 0 : i32
    return %c0_i32, %c0_i32_0 : i32, i32
  }
  func.func @transform_4(%arg0: i32) -> (i32, i32) {
    %c0_i32 = arith.constant 0 : i32
    %c0_i32_0 = arith.constant 0 : i32
    %c0_i32_1 = arith.constant 0 : i32
    return %c0_i32, %c0_i32_0 : i32, i32
  }
  func.func @transform_5(%arg0: i32) -> (i32, i32) {
    %c0_i32 = arith.constant 0 : i32
    %c0_i32_0 = arith.constant 0 : i32
    %c0_i32_1 = arith.constant 0 : i32
    return %c0_i32, %c0_i32_0 : i32, i32
  }
  func.func @transform_6(%arg0: i32) -> (i32, i32) {
    %c0_i32 = arith.constant 0 : i32
    %c0_i32_0 = arith.constant 0 : i32
    %c0_i32_1 = arith.constant 0 : i32
    return %c0_i32, %c0_i32_0 : i32, i32
  }
  func.func @transform_7(%arg0: i32) -> (i32, i32) {
    %c0_i32 = arith.constant 0 : i32
    %c0_i32_0 = arith.constant 0 : i32
    %c0_i32_1 = arith.constant 0 : i32
    return %c0_i32, %c0_i32_0 : i32, i32
  }
  func.func @transform_8(%arg0: i32) -> (i32, i32, i32) {
    %c0_i32 = arith.constant 0 : i32
    %c0_i32_0 = arith.constant 0 : i32
    %c0_i32_1 = arith.constant 0 : i32
    return %arg0, %c0_i32, %c0_i32_0 : i32, i32, i32
  }
  func.func @transform_9(%arg0: i32) -> (i32, i32, i32) {
    %c0_i32 = arith.constant 0 : i32
    %c0_i32_0 = arith.constant 0 : i32
    %c0_i32_1 = arith.constant 0 : i32
    return %arg0, %c0_i32, %c0_i32_0 : i32, i32, i32
  }
}

</mosaic_0001>

<bundles_post_ra>
// kernel: se_block_forward.3
= control target key start
LH: loop header
LB: loop body
LE: loop exit
PB: predicated region body
PF: predicated region fallthrough
CT: control target
= control target key end

     0   :  { %s400_s12 = smov 0   ;;  %s423_s0 = inlined_call_operand.vmem [shape: f32[4,8,256], index: 0, kind: input, shape index: {}]   ;;  %s424_s1 = inlined_call_operand.vmem [shape: f32[4,8,256], index: 1, kind: input, shape index: {}]   ;;  %s425_s2 = inlined_call_operand.vmem [shape: f32[4,8,1], index: 2, kind: input, shape index: {}]   ;;  %s426_s3 = inlined_call_operand.vmem [shape: f32[4,8,256], index: 3, kind: output, shape index: {}]  }
   0x1 LB: > { %s340_s13 = sadd.s32 4294967295, %s377_s12   ;;  %p344_p0 = scmp.ge.s32.totalorder %s377_s12, 1  ;;  %s377_s12 = sphi %s400_s12, %s13_s12  }
   0x2   : > { %p162_p1 = scmp.lt.s32.totalorder %s377_s12, 3 }
   0x4   : > { %p163_p2 = pnand %p344_p0, %p162_p1 }
   0x5   : > { %s345_s14 = sshll.u32 (!%p163_p2), %s340_s13, 1  ;;  %v379_v0 = vmov (!%p163_p2), 0  }
   0x6   : > { %166 = sbr.rel (%p163_p2) target bundleno = 154 (0x9a), region = 32  ;;  %370 = vset.pattern.permute.xlu0 (!%p163_p2), %v379_v0  ;;  %p200_p3 = scmp.lt.s32.totalorder (!%p163_p2), %s345_s14, 3 }
   0xd   : > { %s428_s14 = smov (!%p200_p3, %s345_s14), 3 }
   0xe   : > { %s352_s15 = sshll.u32 %s428_s14, 3  ;;  %s358_s19 = sshll.u32 %s428_s14, 4 }
   0xf   : > { %s217_s18 = scalar_lea.vmem %s425_s2, %s352_s15  ;;  %s211_s22 = scalar_lea.vmem %s424_s1, %s358_s19 }
  0x10   : > { %v234_v1 = vld [vmem:[%s217_s18] sm:$0xff]  ;;  %v235_v2 = vld [vmem:[%s217_s18 + $0x8] sm:$0xff]  ;;  %s204_s25 = scalar_lea.vmem %s423_s0, %s358_s19  ;;  %s224_s28 = scalar_lea.vmem %s426_s3, %s358_s19  ;;  %v232_v10 = vld [vmem:[%s211_s22 + $0x10] sm:$0xff] }
  0x11   : > { %238 = vperm.xlu0 %370, %v234_v1   ;;  %v230_v3 = vld [vmem:[%s211_s22] sm:$0xff]  ;;  %v231_v4 = vld [vmem:[%s211_s22 + $0x8] sm:$0xff]  ;;  %v233_v11 = vld [vmem:[%s211_s22 + $0x18] sm:$0xff] }
  0x12   : > { %v226_v6 = vld [vmem:[%s204_s25] sm:$0xff]  ;;  %v227_v7 = vld [vmem:[%s204_s25 + $0x8] sm:$0xff]  ;;  %v228_v15 = vld [vmem:[%s204_s25 + $0x10] sm:$0xff] }
  0x13   : > { %v229_v16 = vld [vmem:[%s204_s25 + $0x18] sm:$0xff] }
  0x15   : > { %243 = vperm.xlu0 %370, %v235_v2  }
  0x90   : > { %v239_v5 = vpop.permute.xlu0 %238 }
  0x91   : > { %v246_v8 = vmul.f32 %v239_v5, %v230_v3  ;;  %v247_v9 = vmul.f32 %v239_v5, %v231_v4 }
  0x93   : > { %v250_v12 = vadd.f32 %v246_v8, %v226_v6  ;;  %v251_v13 = vadd.f32 %v247_v9, %v227_v7 }
  0x94   : > { %v244_v14 = vpop.permute.xlu0 %243 }
  0x95   : > { %254 = vst [vmem:[%s224_s28] sm:$0xff] %v250_v12  ;;  %255 = vst [vmem:[%s224_s28 + $0x8] sm:$0xff] %v251_v13  ;;  %v248_v17 = vmul.f32 %v244_v14, %v232_v10  ;;  %v249_v18 = vmul.f32 %v244_v14, %v233_v11 }
  0x97   : > { %v252_v19 = vadd.f32 %v248_v17, %v228_v15  ;;  %v253_v20 = vadd.f32 %v249_v18, %v229_v16 }
  0x99   : > { %256 = vst [vmem:[%s224_s28 + $0x10] sm:$0xff] %v252_v19  ;;  %257 = vst [vmem:[%s224_s28 + $0x18] sm:$0xff] %v253_v20 }
  0x9a PF: > { %s13_s12 = sadd.s32 1, %s377_s12  }
  0x9b   : > { %p10_p4 = scmp.ge.s32.totalorder %s13_s12, 4  }
  0x9d   :  { %12 = sbr.rel (!%p10_p4) target bundleno = 1 (0x1), region = 68 }

// kernel: se_block_forward.2
= control target key start
LH: loop header
LB: loop body
LE: loop exit
PB: predicated region body
PF: predicated region fallthrough
CT: control target
= control target key end

     0   :  { %s1889_s30 = smov 0   ;;  %s2466_s0 = inlined_call_operand.vmem [shape: bf16[4,8,362], index: 0, kind: input, shape index: {}]   ;;  %s2467_s1 = inlined_call_operand.vmem [shape: bf16[8,72], index: 1, kind: input, shape index: {}]   ;;  %s2468_s2 = inlined_call_operand.vmem [shape: f32[8,1], index: 2, kind: input, shape index: {}]   ;;  %s2469_s3 = inlined_call_operand.vmem [shape: f32[8,1], index: 3, kind: input, shape index: {}]   ;;  %s2470_s4 = inlined_call_operand.vmem [shape: bf16[8,72], index: 4, kind: input, shape index: {}]   ;;  %s2471_s5 = inlined_call_operand.vmem [shape: f32[8,1], index: 5, kind: input, shape index: {}]   ;;  %s2472_s6 = inlined_call_operand.vmem [shape: f32[8,1], index: 6, kind: input, shape index: {}]   ;;  %s2473_s7 = inlined_call_operand.vmem [shape: f32[1,648], index: 7, kind: input, shape index: {}]   ;;  %s2474_s8 = inlined_call_operand.vmem [shape: f32[4,8,256], index: 8, kind: output, shape index: {0}]   ;;  %s2475_s9 = inlined_call_operand.vmem [shape: f32[4,8,1], index: 9, kind: output, shape index: {1}]  }
   0x1 LB: > { %s1680_s10 = sadd.s32 4294967295, %s1789_s30   ;;  %p1684_p0 = scmp.ge.s32.totalorder %s1789_s30, 1  ;;  %s1789_s30 = sphi %s1889_s30, %s20_s30  }
   0x2   : > { %p292_p1 = scmp.lt.s32.totalorder %s1789_s30, 3 }
   0x4   : > { %p293_p2 = pnand %p1684_p0, %p292_p1 }
   0x5   : > { %s1685_s11 = sshll.u32 (!%p293_p2), %s1680_s10, 1  ;;  %s1791_s16 = smov (!%p293_p2), 127   ;;  %v1805_v7 = vmov (!%p293_p2), 0   ;;  %v681_v9 = vld [vmem:[%s2468_s2] sm:$0xff] (!%p293_p2)  ;;  %vm397_vm0 = vcmask (!%p293_p2), 1039360   ;;  %vm406_vm1 = vcmask (!%p293_p2), 547840  }
   0x6   : > { %296 = sbr.rel (%p293_p2) target bundleno = 1260 (0x4ec), region = 52  ;;  %p336_p3 = scmp.lt.s32.totalorder (!%p293_p2), %s1685_s11, 3  ;;  %740 = vmatprep.mubr.bf16.mxu0 (!%p293_p2), %v1805_v7  ;;  %781 = vmatprep.mubr.bf16.mxu1 (!%p293_p2), %v1805_v7  ;;  %v837_v10 = vld [vmem:[%s2469_s3] sm:$0xff] (!%p293_p2)  ;;  %vm587_vm2 = vcmask (!%p293_p2), 1043456   ;;  %vm384_vm3 = vcmask (!%p293_p2), 556032   ;;  %vm439_vm4 = vcmask (!%p293_p2), 900096  }
   0x7   : > { %s1792_s17 = smov (!%p293_p2), 67   ;;  %s2478_s18 = smov (!%p293_p2), 68   ;;  %1775 = vset.pattern.permute.xlu1 (!%p293_p2), %v1805_v7  ;;  %1776 = vset.pattern.permute.xlu0 (!%p293_p2), %v1805_v7  ;;  %vm418_vm5 = vcmask (!%p293_p2), 1031168   ;;  %vm448_vm6 = vcmask (!%p293_p2), 408576   ;;  %vm427_vm7 = vcmask (!%p293_p2), 539648   ;;  %vm481_vm8 = vcmask (!%p293_p2), 883712  }
   0x8   : > { %s1794_s19 = smov (!%p293_p2), 110   ;;  %s1795_s20 = smov (!%p293_p2), 50   ;;  %vm2482_vm9 = vcmask (!%p293_p2), 891904   ;;  %vm490_vm10 = vcmask (!%p293_p2), 392192   ;;  %vm2486_vm11 = vcmask (!%p293_p2), 400384   ;;  %vm2480_vm12 = vcmask (!%p293_p2), 744448  }
   0x9   : > { %s1796_s21 = smov (!%p293_p2), 126   ;;  %s1797_s22 = smov (!%p293_p2), 66   ;;  %vm2481_vm13 = vcmask (!%p293_p2), 752640   ;;  %vm2485_vm14 = vcmask (!%p293_p2), 252928   ;;  %vm2484_vm15 = vcmask (!%p293_p2), 261120  }
   0xa   : > { %s1798_s23 = smov (!%p293_p2), 108   ;;  %s1799_s24 = smov (!%p293_p2), 48  }
   0xb   : > { %s1800_s25 = smov (!%p293_p2), 109   ;;  %s1801_s26 = smov (!%p293_p2), 49  }
   0xc   : > { %s1802_s27 = smov (!%p293_p2), 91   ;;  %s1803_s28 = smov (!%p293_p2), 31  }
   0xd   : > { %s2508_s11 = smov (!%p336_p3, %s1685_s11), 3  ;;  %s2476_s29 = smov 92  }
   0xe   : > { %s1718_s12 = smul.u32 12, %s2508_s11  ;;  %s1806_s10 = smov 32  }
   0xf   : > { %s1808_s13 = smov 30   ;;  %s2487_s14 = smov 92  }
  0x10   : > { %s1903_s15 = scalar_lea.vmem %s2466_s0, %s1718_s12  ;;  %s1807_s12 = smov 90  }
  0x11   : > { %v357_v0 = vld [vmem:[%s1903_s15] sm:$0xff]  ;;  %v1692_v3 = vld [vmem:[%s1903_s15 + $0xc] sm:$0xff]  ;;  %v1916_v4 = vld [vmem:[%s1903_s15 + $0x8] ss:$0 sps:$4 sm:$0xff]  }
  0x12   : > { %v1906_v1 = vcombine.high %v357_v0, %v357_v0  ;;  %v1908_v2 = vcombine.low %v357_v0, %v357_v0  ;;  %v1697_v5 = vcombine.low %v1692_v3, %v1692_v3  ;;  %v1698_v6 = vcombine.high %v1692_v3, %v1692_v3  ;;  %v1782_v8 = vld [vmem:[%s1903_s15 + $0x14] ss:$0 sps:$4 sm:$0xff]   ;;  %s1816_s15 = smov 99  }
  0x14   : > { %393 = vrot.lane.b32.xlu0 %v1906_v1, %s1791_s16  ;;  %391 = vrot.lane.b32.xlu1 %v1908_v2, %s1791_s16 }
  0x18   : > { %395 = vrot.lane.b32.xlu0 %v1916_v4, %s1791_s16  ;;  %400 = vrot.lane.b32.xlu1 %v1697_v5, %s1792_s17 }
  0x1c   : > { %402 = vrot.lane.b32.xlu0 %v1698_v6, %s1792_s17  ;;  %378 = vrot.lane.b32.xlu1 %v1697_v5, %s2478_s18 }
  0x20   : > { %380 = vrot.lane.b32.xlu0 %v1698_v6, %s2478_s18  ;;  %435 = vrot.lane.b32.xlu1 %v1906_v1, %s1794_s19 }
  0x24   : > { %437 = vrot.lane.b32.xlu0 %v1916_v4, %s1794_s19  ;;  %433 = vrot.lane.b32.xlu1 %v1908_v2, %s1794_s19 }
  0x28   : > { %442 = vrot.lane.b32.xlu0 %v1697_v5, %s1795_s20  ;;  %444 = vrot.lane.b32.xlu1 %v1698_v6, %s1795_s20 }
  0x2c   : > { %414 = vrot.lane.b32.xlu0 %v1906_v1, %s1796_s21  ;;  %416 = vrot.lane.b32.xlu1 %v1916_v4, %s1796_s21 }
  0x30   : > { %412 = vrot.lane.b32.xlu0 %v1908_v2, %s1796_s21  ;;  %421 = vrot.lane.b32.xlu1 %v1697_v5, %s1797_s22 }
  0x34   : > { %423 = vrot.lane.b32.xlu0 %v1698_v6, %s1797_s22  ;;  %477 = vrot.lane.b32.xlu1 %v1906_v1, %s1798_s23 }
  0x38   : > { %479 = vrot.lane.b32.xlu0 %v1916_v4, %s1798_s23  ;;  %475 = vrot.lane.b32.xlu1 %v1908_v2, %s1798_s23 }
  0x3c   : > { %484 = vrot.lane.b32.xlu0 %v1697_v5, %s1799_s24  ;;  %486 = vrot.lane.b32.xlu1 %v1698_v6, %s1799_s24 }
  0x40   : > { %456 = vrot.lane.b32.xlu0 %v1906_v1, %s1800_s25  ;;  %458 = vrot.lane.b32.xlu1 %v1916_v4, %s1800_s25 }
  0x44   : > { %454 = vrot.lane.b32.xlu0 %v1908_v2, %s1800_s25  ;;  %463 = vrot.lane.b32.xlu1 %v1697_v5, %s1801_s26 }
  0x48   : > { %465 = vrot.lane.b32.xlu0 %v1698_v6, %s1801_s26  ;;  %519 = vrot.lane.b32.xlu1 %v1906_v1, %s1802_s27 }
  0x4c   : > { %521 = vrot.lane.b32.xlu0 %v1916_v4, %s1802_s27  ;;  %517 = vrot.lane.b32.xlu1 %v1908_v2, %s1802_s27 }
  0x50   : > { %526 = vrot.lane.b32.xlu0 %v1697_v5, %s1803_s28  ;;  %528 = vrot.lane.b32.xlu1 %v1698_v6, %s1803_s28 }
  0x54   : > { %498 = vrot.lane.b32.xlu0 %v1906_v1, %s2476_s29  ;;  %500 = vrot.lane.b32.xlu1 %v1916_v4, %s2476_s29 }
  0x58   : > { %496 = vrot.lane.b32.xlu0 %v1908_v2, %s2476_s29  ;;  %505 = vrot.lane.b32.xlu1 %v1697_v5, %s1806_s10  ;;  %s1810_s29 = smov 79  }
  0x5c   : > { %507 = vrot.lane.b32.xlu0 %v1698_v6, %s1806_s10  ;;  %538 = vrot.lane.b32.xlu1 %v1908_v2, %s1807_s12 }
  0x60   : > { %540 = vrot.lane.b32.xlu0 %v1906_v1, %s1807_s12  ;;  %542 = vrot.lane.b32.xlu1 %v1916_v4, %s1807_s12 }
  0x64   : > { %547 = vrot.lane.b32.xlu0 %v1697_v5, %s1808_s13  ;;  %549 = vrot.lane.b32.xlu1 %v1698_v6, %s1808_s13 }
  0x68   : > { %404 = vrot.lane.b32.xlu0 %v1782_v8, %s1792_s17  ;;  %382 = vrot.lane.b32.xlu1 %v1782_v8, %s2478_s18  ;;  %s1809_s18 = smov 19  }
  0x6c   : > { %446 = vrot.lane.b32.xlu0 %v1782_v8, %s1795_s20  ;;  %425 = vrot.lane.b32.xlu1 %v1782_v8, %s1797_s22 }
  0x70   : > { %488 = vrot.lane.b32.xlu0 %v1782_v8, %s1799_s24  ;;  %467 = vrot.lane.b32.xlu1 %v1782_v8, %s1801_s26 }
  0x74   : > { %530 = vrot.lane.b32.xlu0 %v1782_v8, %s1803_s28  ;;  %509 = vrot.lane.b32.xlu1 %v1782_v8, %s1806_s10 }
  0x78   : > { %551 = vrot.lane.b32.xlu0 %v1782_v8, %s1808_s13  ;;  %684 = vperm.xlu1 %1775, %v681_v9  }
  0x7c   : > { %840 = vperm.xlu0 %1776, %v837_v10  }
  0x86   : > { %v394_v11 = vpop.permute.xlu0 %393  ;;  %v392_v12 = vpop.permute.xlu1 %391 }
  0x87   : > { %v398_v13 = vsel %vm397_vm0, %v392_v12, %v394_v11 }
  0x88   : > { %v560_v16 = vrot.slane %v398_v13, 4 }
  0x8a   : > { %v396_v14 = vpop.permute.xlu0 %395  ;;  %v401_v15 = vpop.permute.xlu1 %400  ;;  %v590_v23 = vsel %vm587_vm2, %v1908_v2, %v560_v16 }
  0x8b   : > { %v399_v17 = vsel %vm397_vm0, %v394_v11, %v396_v14  ;;  %v411_v24 = vsel %vm384_vm3, %v396_v14, %v401_v15 }
  0x8c   : > { %v561_v18 = vrot.slane %v399_v17, 4  ;;  %v562_v29 = vrot.slane %v411_v24, 4 }
  0x8e   : > { %v2002_v19 = vpop.permute.xlu0 %402  ;;  %v379_v20 = vpop.permute.xlu1 %378  ;;  %v594_v21 = vsel %vm587_vm2, %v1906_v1, %v561_v18 }
  0x8f   : > { %v407_v22 = vsel %vm406_vm1, %v401_v15, %v2002_v19  ;;  %708 = vmatprep.subr.bf16.mxu0 %v594_v21  ;;  %v390_v28 = vsel %vm384_vm3, %v1916_v4, %v379_v20 }
  0x90   : > { %709 = vmatpush1.bf16.msra.mxu0 %v590_v23  ;;  %v563_v25 = vrot.slane %v407_v22, 4  ;;  %v597_v32 = vsel %vm587_vm2, %v390_v28, %v562_v29 }
  0x92   : > { %v2011_v26 = vpop.permute.xlu0 %380  ;;  %v436_v27 = vpop.permute.xlu1 %435 }
  0x93   : > { %v385_v30 = vsel %vm384_vm3, %v379_v20, %v2011_v26 }
  0x94   : > { %v601_v31 = vsel %vm587_vm2, %v385_v30, %v563_v25 }
  0x95   : > { %749 = vmatprep.subr.bf16.mxu1 %v601_v31 }
  0x96   : > { %v438_v33 = vpop.permute.xlu0 %437  ;;  %750 = vmatpush1.bf16.msra.mxu1 %v597_v32  ;;  %v434_v34 = vpop.permute.xlu1 %433 }
  0x97   : > { %v441_v37 = vsel %vm439_vm4, %v436_v27, %v438_v33  ;;  %v440_v41 = vsel %vm439_vm4, %v434_v34, %v436_v27 }
  0x98   : > { %v568_v38 = vrot.slane %v441_v37, 4  ;;  %v567_v44 = vrot.slane %v440_v41, 4 }
  0x9a   : > { %v443_v35 = vpop.permute.xlu0 %442  ;;  %v2019_v36 = vpop.permute.xlu1 %444 }
  0x9b   : > { %v449_v47 = vsel %vm448_vm6, %v443_v35, %v2019_v36  ;;  %v453_v49 = vsel %vm384_vm3, %v438_v33, %v443_v35 }
  0x9c   : > { %v570_v51 = vrot.slane %v449_v47, 4  ;;  %v569_v55 = vrot.slane %v453_v49, 4 }
  0x9e   : > { %v415_v39 = vpop.permute.xlu0 %414  ;;  %v417_v40 = vpop.permute.xlu1 %416 }
  0x9f   : > { %v420_v42 = vsel %vm418_vm5, %v415_v39, %v417_v40 }
  0xa0   : > { %v617_v43 = vsel %vm587_vm2, %v420_v42, %v568_v38 }
  0xa1   : > { %710 = vmatprep.subr.bf16.mxu0 %v617_v43 }
  0xa2   : > { %v413_v45 = vpop.permute.xlu0 %412  ;;  %v422_v46 = vpop.permute.xlu1 %421 }
  0xa3   : > { %v419_v48 = vsel %vm418_vm5, %v413_v45, %v415_v39  ;;  %v432_v52 = vsel %vm384_vm3, %v417_v40, %v422_v46 }
  0xa4   : > { %v613_v50 = vsel %vm587_vm2, %v419_v48, %v567_v44  ;;  %v620_v58 = vsel %vm587_vm2, %v432_v52, %v569_v55 }
  0xa5   : > { %711 = vmatpush1.bf16.msra.mxu0 %v613_v50 }
  0xa6   : > { %v2031_v53 = vpop.permute.xlu0 %423  ;;  %v478_v54 = vpop.permute.xlu1 %477 }
  0xa7   : > { %v428_v56 = vsel %vm427_vm7, %v422_v46, %v2031_v53 }
  0xa8   : > { %v624_v57 = vsel %vm587_vm2, %v428_v56, %v570_v51 }
  0xa9   : > { %751 = vmatprep.subr.bf16.mxu1 %v624_v57  ;;  %v680_v57 = vld [vmem:[%s2467_s1] sm:$0xf] }
  0xaa   : > { %v480_v59 = vpop.permute.xlu0 %479  ;;  %752 = vmatpush1.bf16.msra.mxu1 %v620_v58  ;;  %v476_v60 = vpop.permute.xlu1 %475 }
  0xab   : > { %v483_v63 = vsel %vm481_vm8, %v478_v54, %v480_v59  ;;  %v482_v3 = vsel %vm481_vm8, %v476_v60, %v478_v54 }
  0xac   : > { %v575_v0 = vrot.slane %v483_v63, 4  ;;  %v574_v6 = vrot.slane %v482_v3, 4 }
  0xae   : > { %v485_v61 = vpop.permute.xlu0 %484  ;;  %v2037_v62 = vpop.permute.xlu1 %486 }
  0xaf   : > { %v491_v10 = vsel %vm490_vm10, %v485_v61, %v2037_v62  ;;  %v495_v12 = vsel %vm384_vm3, %v480_v59, %v485_v61 }
  0xb0   : > { %v577_v14 = vrot.slane %v491_v10, 4  ;;  %v576_v18 = vrot.slane %v495_v12, 4 }
  0xb2   : > { %v457_v1 = vpop.permute.xlu0 %456  ;;  %v459_v2 = vpop.permute.xlu1 %458 }
  0xb3   : > { %v462_v4 = vsel %vm2482_vm9, %v457_v1, %v459_v2 }
  0xb4   : > { %v640_v5 = vsel %vm587_vm2, %v462_v4, %v575_v0 }
  0xb5   : > { %712 = vmatprep.subr.bf16.mxu0 %v640_v5 }
  0xb6   : > { %v455_v8 = vpop.permute.xlu0 %454  ;;  %v464_v9 = vpop.permute.xlu1 %463 }
  0xb7   : > { %v461_v11 = vsel %vm2482_vm9, %v455_v8, %v457_v1  ;;  %v474_v15 = vsel %vm384_vm3, %v459_v2, %v464_v9  ;;  %vm687_vm9 = vcmask 588800  }
  0xb8   : > { %v636_v13 = vsel %vm587_vm2, %v461_v11, %v574_v6  ;;  %v643_v22 = vsel %vm587_vm2, %v474_v15, %v576_v18 }
  0xb9   : > { %713 = vmatpush1.bf16.msra.mxu0 %v636_v13 }
  0xba   : > { %v2049_v16 = vpop.permute.xlu0 %465  ;;  %v520_v17 = vpop.permute.xlu1 %519 }
  0xbb   : > { %v470_v20 = vsel %vm2486_vm11, %v464_v9, %v2049_v16 }
  0xbc   : > { %v647_v21 = vsel %vm587_vm2, %v470_v20, %v577_v14 }
  0xbd   : > { %753 = vmatprep.subr.bf16.mxu1 %v647_v21 }
  0xbe   : > { %v522_v23 = vpop.permute.xlu0 %521  ;;  %754 = vmatpush1.bf16.msra.mxu1 %v643_v22  ;;  %v518_v24 = vpop.permute.xlu1 %517 }
  0xbf   : > { %v525_v28 = vsel %vm2480_vm12, %v520_v17, %v522_v23  ;;  %v524_v32 = vsel %vm2480_vm12, %v518_v24, %v520_v17  ;;  %vm544_vm12 = vcmask 736256  }
  0xc0   : > { %v582_v29 = vrot.slane %v525_v28, 4  ;;  %v581_v35 = vrot.slane %v524_v32, 4 }
  0xc2   : > { %v527_v25 = vpop.permute.xlu0 %526  ;;  %v2055_v27 = vpop.permute.xlu1 %528 }
  0xc3   : > { %v533_v39 = vsel %vm2485_vm14, %v527_v25, %v2055_v27  ;;  %v537_v41 = vsel %vm384_vm3, %v522_v23, %v527_v25 }
  0xc4   : > { %v584_v43 = vrot.slane %v533_v39, 4  ;;  %v583_v47 = vrot.slane %v537_v41, 4 }
  0xc6   : > { %v499_v30 = vpop.permute.xlu0 %498  ;;  %v501_v31 = vpop.permute.xlu1 %500 }
  0xc7   : > { %v504_v33 = vsel %vm2481_vm13, %v499_v30, %v501_v31 }
  0xc8   : > { %v663_v34 = vsel %vm587_vm2, %v504_v33, %v582_v29 }
  0xc9   : > { %714 = vmatprep.subr.bf16.mxu0 %v663_v34 }
  0xca   : > { %v497_v37 = vpop.permute.xlu0 %496  ;;  %v506_v38 = vpop.permute.xlu1 %505 }
  0xcb   : > { %v503_v40 = vsel %vm2481_vm13, %v497_v37, %v499_v30  ;;  %v516_v44 = vsel %vm384_vm3, %v501_v31, %v506_v38  ;;  %vm2483_vm13 = vcmask 244736  }
  0xcc   : > { %v659_v42 = vsel %vm587_vm2, %v503_v40, %v581_v35  ;;  %v666_v50 = vsel %vm587_vm2, %v516_v44, %v583_v47 }
  0xcd   : > { %715 = vmatpush1.bf16.msra.mxu0 %v659_v42 }
  0xce   : > { %v2067_v45 = vpop.permute.xlu0 %507  ;;  %v539_v46 = vpop.permute.xlu1 %538 }
  0xcf   : > { %v512_v48 = vsel %vm2484_vm15, %v506_v38, %v2067_v45  ;;  %v356_v38 = vld [vmem:[%s2473_s7] sm:$0x3f] }
  0xd0   : > { %v670_v49 = vsel %vm587_vm2, %v512_v48, %v584_v43 }
  0xd1   : > { %755 = vmatprep.subr.bf16.mxu1 %v670_v49 }
  0xd2   : > { %v541_v51 = vpop.permute.xlu0 %540  ;;  %756 = vmatpush1.bf16.msra.mxu1 %v666_v50  ;;  %v543_v52 = vpop.permute.xlu1 %542 }
  0xd3   : > { %v546_v54 = vsel %vm544_vm12, %v541_v51, %v543_v52  ;;  %v545_v55 = vsel %vm544_vm12, %v539_v46, %v541_v51 }
  0xd4   : > { %1700 = vmatprep.subr.msk.bf16.mxu0 %vm587_vm2, %v546_v54  ;;  %v692_v56 = vsel %vm587_vm2, %v545_v55, 0 }
  0xd5   : > { %717 = vmatpush1.bf16.msra.mxu0 %v692_v56 }
  0xd6   : > { %v548_v58 = vpop.permute.xlu0 %547  ;;  %v550_v59 = vpop.permute.xlu1 %549 }
  0xd7   : > { %v554_v60 = vsel %vm2483_vm13, %v548_v58, %v550_v59  ;;  %v558_v61 = vsel %vm384_vm3, %v543_v52, %v548_v58 }
  0xd8   : > { %1701 = vmatmul.mubr.msk.bf16.vlgmr.msra.gmra.mrb[0].mxu0 %vm687_vm9, %v680_v57  ;;  %1702 = vmatprep.subr.msk.bf16.mxu1 %vm587_vm2, %v554_v60  ;;  %v697_v63 = vsel %vm587_vm2, %v558_v61, 0 }
  0xd9   : > { %758 = vmatpush1.bf16.msra.mxu1 %v697_v63  ;;  %822 = vmatprep.mubr.bf16.mxu0 %v1805_v7 }
  0xda   : > { %v405_v0 = vpop.permute.xlu0 %404  ;;  %v383_v1 = vpop.permute.xlu1 %382 }
  0xdb   : > { %v408_v2 = vsel %vm406_vm1, %v2002_v19, %v405_v0  ;;  %v565_v3 = vrot.slane %v405_v0, 4  ;;  %v386_v5 = vsel %vm384_vm3, %v2011_v26, %v383_v1 }
  0xdc   : > { %v564_v4 = vrot.slane %v408_v2, 4  ;;  %1703 = vmatmul.mubr.msk.bf16.vlgmr.msra.gmra.mrb[0].mxu1 %vm687_vm9, %v680_v57 }
  0xdd   : > { %v609_v6 = vsel %vm587_vm2, %v383_v1, %v565_v3  ;;  %1280 = vmatprep.mubr.bf16.mxu1 %v1805_v7 }
  0xde   : > { %v447_v8 = vpop.permute.xlu0 %446  ;;  %790 = vmatprep.subr.bf16.mxu0 %v609_v6  ;;  %v426_v9 = vpop.permute.xlu1 %425  ;;  %v605_v10 = vsel %vm587_vm2, %v386_v5, %v564_v4 }
  0xdf   : > { %v450_v11 = vsel %vm448_vm6, %v2019_v36, %v447_v8  ;;  %v572_v19 = vrot.slane %v447_v8, 4  ;;  %791 = vmatpush1.bf16.msra.mxu0 %v605_v10  ;;  %v429_v13 = vsel %vm427_vm7, %v2031_v53, %v426_v9 }
  0xe0   : > { %v571_v12 = vrot.slane %v450_v11, 4 }
  0xe1   : > { %v632_v26 = vsel %vm587_vm2, %v426_v9, %v572_v19 }
  0xe2   : > { %v489_v14 = vpop.permute.xlu0 %488  ;;  %792 = vmatprep.subr.bf16.mxu0 %v632_v26  ;;  %v468_v15 = vpop.permute.xlu1 %467  ;;  %v628_v17 = vsel %vm587_vm2, %v429_v13, %v571_v12 }
  0xe3   : > { %v492_v18 = vsel %vm490_vm10, %v2037_v62, %v489_v14  ;;  %v579_v20 = vrot.slane %v489_v14, 4  ;;  %793 = vmatpush1.bf16.msra.mxu0 %v628_v17  ;;  %v471_v36 = vsel %vm2486_vm11, %v2049_v16, %v468_v15 }
  0xe4   : > { %v578_v21 = vrot.slane %v492_v18, 4 }
  0xe5   : > { %v655_v22 = vsel %vm587_vm2, %v468_v15, %v579_v20 }
  0xe6   : > { %v531_v23 = vpop.permute.xlu0 %530  ;;  %794 = vmatprep.subr.bf16.mxu0 %v655_v22  ;;  %v510_v53 = vpop.permute.xlu1 %509  ;;  %v651_v24 = vsel %vm587_vm2, %v471_v36, %v578_v21 }
  0xe7   : > { %v534_v25 = vsel %vm2485_vm14, %v2055_v27, %v531_v23  ;;  %v586_v28 = vrot.slane %v531_v23, 4  ;;  %795 = vmatpush1.bf16.msra.mxu0 %v651_v24  ;;  %v513_v62 = vsel %vm2484_vm15, %v2067_v45, %v510_v53  ;;  %v856_v27 = vlaneseq }
  0xe8   : > { %v585_v29 = vrot.slane %v534_v25, 4 }
  0xe9   : > { %v678_v30 = vsel %vm587_vm2, %v510_v53, %v586_v28  ;;  %v857_v34 = vshrl.u32 %v856_v27, 7 }
  0xea   : > { %v552_v31 = vpop.permute.xlu0 %551  ;;  %796 = vmatprep.subr.bf16.mxu0 %v678_v30  ;;  %v674_v16 = vsel %vm587_vm2, %v513_v62, %v585_v29 }
  0xeb   : > { %v555_v32 = vsel %vm2483_vm13, %v550_v59, %v552_v31  ;;  %797 = vmatpush1.bf16.msra.mxu0 %v674_v16  ;;  %v858_v37 = vsub.s32 0, %v857_v34  ;;  %v866_v45 = vsub.s32 2, %v857_v34  ;;  %v870_v48 = vsub.s32 3, %v857_v34 }
  0xec   : > { %1704 = vmatprep.subr.msk.bf16.mxu0 %vm587_vm2, %v552_v31  ;;  %v703_v33 = vsel %vm587_vm2, %v555_v32, 0  ;;  %v862_v1 = vsub.s32 1, %v857_v34  ;;  %v874_v13 = vsub.s32 4, %v857_v34  ;;  %v878_v26 = vsub.s32 5, %v857_v34 }
  0xed   : > { %v2120_v44 = vrot.slane %v356_v38, %v858_v37  ;;  %v2123_v58 = vrot.slane %v356_v38, %v866_v45  ;;  %v2125_v61 = vrot.slane %v356_v38, %v870_v48  ;;  %v1377_v48 = vld [vmem:[%s2472_s6] sm:$0xff] }
  0xee   : > { %v2130_v9 = vrot.slane %v356_v38, %v862_v1  ;;  %v2137_v20 = vrot.slane %v356_v38, %v874_v13  ;;  %v2139_v22 = vrot.slane %v356_v38, %v878_v26 }
  0xef   : > { %799 = vmatpush1.bf16.msra.mxu0 %v703_v33 }
  0xf2   : > { %1705 = vmatmul.mubr.msk.bf16.vlgmr.msra.gmra.mrb[4].mxu0 %vm687_vm9, %v680_v57 }
  0xf3   : > { %1321 = vmatprep.mubr.bf16.mxu0 %v1805_v7 }
  0xf7   : > { %v685_v35 = vpop.permute.xlu1 %684 }
  0xfb   : > { %v841_v40 = vpop.permute.xlu0 %840 }
 0x1ab   : > { %v742_v39 = vpop.f32.mrb[0].mxu0 }
 0x1ac   : > { %v744_v41 = vpop.f32.mrb[1].mxu0  ;;  %v743_v42 = vadd.f32 %v742_v39, %v685_v35 }
 0x1ad   : > { %v746_v43 = vpop.f32.mrb[2].mxu0  ;;  %v745_v50 = vadd.f32 %v744_v41, %v685_v35 }
 0x1ae   : > { %v747_v46 = vpop.f32.mrb[3].mxu0  ;;  %vm831_vm13 = vcmp.gt.f32.partialorder %v743_v42, 0.0  ;;  %v843_v47 = vmul.f32 %v841_v40, %v743_v42 }
 0x1af   : > { %v783_v49 = vpop.f32.mrb[0].mxu1  ;;  %v844_v3 = vmul.f32 %v841_v40, %v745_v50  ;;  %vm832_vm11 = vcmp.gt.f32.partialorder %v745_v50, 0.0 }
 0x1b0   : > { %v784_v51 = vadd.f32 %v783_v49, %v685_v35  ;;  %v785_v52 = vpop.f32.mrb[1].mxu1  ;;  %v849_v54 = vsel %vm831_vm13, %v743_v42, %v843_v47  ;;  %v1222_v47 = vld [vmem:[%s2471_s5] sm:$0xff] }
 0x1b1   : > { %v786_v55 = vadd.f32 %v785_v52, %v685_v35  ;;  %v787_v56 = vpop.f32.mrb[2].mxu1  ;;  %v886_v57 = vmul.f32 %v2120_v44, %v849_v54  ;;  %v850_v11 = vsel %vm832_vm11, %v745_v50, %v844_v3 }
 0x1b2   : > { %vm833_vm15 = vcmp.gt.f32.partialorder %v784_v51, 0.0  ;;  %v845_v59 = vmul.f32 %v841_v40, %v784_v51  ;;  %v788_v60 = vpop.f32.mrb[3].mxu1  ;;  %v887_v19 = vmul.f32 %v2130_v9, %v850_v11 }
 0x1b3   : > { %vm834_vm14 = vcmp.gt.f32.partialorder %v786_v55, 0.0  ;;  %v846_v63 = vmul.f32 %v841_v40, %v786_v55  ;;  %v892_v0 = vpack.c.bf16 %v886_v57, %v886_v57 }
 0x1b4   : > { %v851_v2 = vsel %vm833_vm15, %v784_v51, %v845_v59  ;;  %v893_v12 = vpack.c.bf16 %v887_v19, %v887_v19  ;;  %vm914_vm15 = vcmask 711680  }
 0x1b5   : > { %v852_v4 = vsel %vm834_vm14, %v786_v55, %v846_v63  ;;  %901 = vrot.lane.b32.xlu0 %v892_v0, %s1809_s18  ;;  %v888_v5 = vmul.f32 %v2123_v58, %v851_v2  ;;  %vm907_vm14 = vcmask 154624  }
 0x1b6   : > { %v889_v6 = vmul.f32 %v2125_v61, %v852_v4 }
 0x1b7   : > { %v894_v8 = vpack.c.bf16 %v888_v5, %v888_v5 }
 0x1b8   : > { %v895_v10 = vpack.c.bf16 %v889_v6, %v889_v6 }
 0x1b9   : > { %905 = vrot.lane.b32.xlu1 %v894_v8, %s1809_s18 }
 0x1ba   : > { %922 = vrot.lane.b32.xlu0 %v895_v10, %s1810_s29 }
 0x1bd   : > { %920 = vrot.lane.b32.xlu1 %v894_v8, %s1810_s29 }
 0x1c1   : > { %903 = vrot.lane.b32.xlu1 %v893_v12, %s1809_s18 }
 0x1c5   : > { %v824_v14 = vpop.f32.mrb[4].mxu0 }
 0x1c6   : > { %v825_v15 = vadd.f32 %v824_v14, %v685_v35  ;;  %v826_v17 = vpop.f32.mrb[5].mxu0 }
 0x1c7   : > { %v827_v18 = vadd.f32 %v826_v17, %v685_v35  ;;  %v828_v21 = vpop.f32.mrb[6].mxu0 }
 0x1c8   : > { %vm835_vm11 = vcmp.gt.f32.partialorder %v825_v15, 0.0  ;;  %v847_v36 = vmul.f32 %v841_v40, %v825_v15  ;;  %v829_v23 = vpop.f32.mrb[7].mxu0 }
 0x1c9   : > { %vm836_vm13 = vcmp.gt.f32.partialorder %v827_v18, 0.0  ;;  %v848_v53 = vmul.f32 %v841_v40, %v827_v18 }
 0x1ca   : > { %v853_v24 = vsel %vm835_vm11, %v825_v15, %v847_v36  ;;  %vm928_vm11 = vcmask 646144  }
 0x1cb   : > { %v854_v25 = vsel %vm836_vm13, %v827_v18, %v848_v53  ;;  %v890_v28 = vmul.f32 %v2137_v20, %v853_v24  ;;  %vm2493_vm13 = vcmask 752640  }
 0x1cc   : > { %v891_v29 = vmul.f32 %v2139_v22, %v854_v25 }
 0x1cd   : > { %v896_v62 = vpack.c.bf16 %v890_v28, %v890_v28 }
 0x1ce   : > { %v897_v30 = vpack.c.bf16 %v891_v29, %v891_v29 }
 0x1cf   : > { %924 = vrot.lane.b32.xlu1 %v896_v62, %s1810_s29 }
 0x1d0   : > { %926 = vrot.lane.b32.xlu0 %v897_v30, %s1810_s29 }
 0x227   : > { %v902_v31 = vpop.permute.xlu0 %901 }
 0x228   : > { %v2146_v16 = vsel %vm907_vm14, 0, %v902_v31 }
 0x229   : > { %988 = vrot.lane.b32.xlu0 %v2146_v16, %s1794_s19  ;;  %950 = vrot.lane.b32.xlu1 %v2146_v16, %s1791_s16 }
 0x22b   : > { %v906_v32 = vpop.permute.xlu1 %905 }
 0x22c   : > { %v923_v38 = vpop.permute.xlu0 %922 }
 0x22d   : > { %1026 = vrot.lane.b32.xlu0 %v2146_v16, %s1798_s23  ;;  %969 = vrot.lane.b32.xlu1 %v2146_v16, %s1796_s21 }
 0x22f   : > { %v921_v33 = vpop.permute.xlu1 %920 }
 0x230   : > { %v929_v39 = vsel %vm928_vm11, %v921_v33, %v923_v38 }
 0x231   : > { %1064 = vrot.lane.b32.xlu0 %v2146_v16, %s1802_s27  ;;  %1007 = vrot.lane.b32.xlu1 %v2146_v16, %s1800_s25  ;;  %v933_v40 = vsel %vm907_vm14, 0, %v929_v39 }
 0x233   : > { %v904_v27 = vpop.permute.xlu1 %903 }
 0x234   : > { %v2165_v34 = vsel %vm907_vm14, %v902_v31, %v904_v27  ;;  %v909_v35 = vsel %vm907_vm14, %v904_v27, %v906_v32  ;;  %vm2494_vm14 = vmmov %vm2493_vm13 }
 0x235   : > { %1083 = vrot.lane.b32.xlu0 %v2146_v16, %s1807_s12  ;;  %1045 = vrot.lane.b32.xlu1 %v2146_v16, %s2487_s14  ;;  %v2181_v37 = vsel %vm914_vm15, %v909_v35, 0 }
 0x239   : > { %990 = vrot.lane.b32.xlu0 %v2165_v34, %s1794_s19  ;;  %952 = vrot.lane.b32.xlu1 %v2165_v34, %s1791_s16 }
 0x23d   : > { %1028 = vrot.lane.b32.xlu0 %v2165_v34, %s1798_s23  ;;  %971 = vrot.lane.b32.xlu1 %v2165_v34, %s1796_s21 }
 0x241   : > { %1066 = vrot.lane.b32.xlu0 %v2165_v34, %s1802_s27  ;;  %1009 = vrot.lane.b32.xlu1 %v2165_v34, %s1800_s25  ;;  %v925_v41 = vpop.permute.xlu1 %924 }
 0x242   : > { %v930_v42 = vsel %vm928_vm11, %v923_v38, %v925_v41  ;;  %v927_v43 = vpop.permute.xlu0 %926 }
 0x243   : > { %v931_v45 = vsel %vm928_vm11, %v925_v41, %v927_v43 }
 0x244   : > { %v935_v46 = vsel %vm914_vm15, %v931_v45, 0  ;;  %vm2497_vm15 = vcmask 261120  }
 0x245   : > { %954 = vrot.lane.b32.xlu0 %v2181_v37, %s1791_s16  ;;  %1047 = vrot.lane.b32.xlu1 %v2165_v34, %s2487_s14  ;;  %s2488_s16 = smov 68   ;;  %vm2500_vm11 = vmmov %vm2497_vm15 }
 0x249   : > { %973 = vrot.lane.b32.xlu0 %v2181_v37, %s1796_s21  ;;  %1085 = vrot.lane.b32.xlu1 %v2165_v34, %s1807_s12  ;;  %s1822_s21 = smov 87  }
 0x24d   : > { %1011 = vrot.lane.b32.xlu0 %v2181_v37, %s1800_s25  ;;  %992 = vrot.lane.b32.xlu1 %v2181_v37, %s1794_s19  ;;  %s1821_s19 = smov 23  }
 0x251   : > { %1049 = vrot.lane.b32.xlu0 %v2181_v37, %s2487_s14  ;;  %1030 = vrot.lane.b32.xlu1 %v2181_v37, %s1798_s23  ;;  %s1817_s14 = smov 97   ;;  %s1826_s23 = smov 39  }
 0x255   : > { %1068 = vrot.lane.b32.xlu1 %v2181_v37, %s1802_s27  ;;  %958 = vrot.lane.b32.xlu0 %v933_v40, %s1792_s17 }
 0x259   : > { %938 = vrot.lane.b32.xlu1 %v933_v40, %s2488_s16  ;;  %1087 = vrot.lane.b32.xlu0 %v2181_v37, %s1807_s12  ;;  %s1814_s12 = smov 103  }
 0x25d   : > { %996 = vrot.lane.b32.xlu1 %v933_v40, %s1795_s20  ;;  %940 = vrot.lane.b32.xlu0 %v930_v42, %s2488_s16 }
 0x261   : > { %977 = vrot.lane.b32.xlu1 %v933_v40, %s1797_s22  ;;  %998 = vrot.lane.b32.xlu0 %v930_v42, %s1795_s20 }
 0x265   : > { %1034 = vrot.lane.b32.xlu1 %v933_v40, %s1799_s24  ;;  %979 = vrot.lane.b32.xlu0 %v930_v42, %s1797_s22 }
 0x269   : > { %1015 = vrot.lane.b32.xlu1 %v933_v40, %s1801_s26  ;;  %1036 = vrot.lane.b32.xlu0 %v930_v42, %s1799_s24 }
 0x26d   : > { %1072 = vrot.lane.b32.xlu1 %v933_v40, %s1803_s28  ;;  %1017 = vrot.lane.b32.xlu0 %v930_v42, %s1801_s26 }
 0x271   : > { %1053 = vrot.lane.b32.xlu1 %v933_v40, %s1806_s10  ;;  %1074 = vrot.lane.b32.xlu0 %v930_v42, %s1803_s28 }
 0x275   : > { %960 = vrot.lane.b32.xlu1 %v930_v42, %s1792_s17  ;;  %1055 = vrot.lane.b32.xlu0 %v930_v42, %s1806_s10 }
 0x279   : > { %942 = vrot.lane.b32.xlu0 %v935_v46, %s2488_s16  ;;  %962 = vrot.lane.b32.xlu1 %v935_v46, %s1792_s17  ;;  %s1818_s16 = smov 93   ;;  %s1823_s17 = smov 85  }
 0x27d   : > { %981 = vrot.lane.b32.xlu0 %v935_v46, %s1797_s22  ;;  %1000 = vrot.lane.b32.xlu1 %v935_v46, %s1795_s20  ;;  %s1824_s20 = smov 41   ;;  %s1825_s22 = smov 17  }
 0x281   : > { %1019 = vrot.lane.b32.xlu0 %v935_v46, %s1801_s26  ;;  %1038 = vrot.lane.b32.xlu1 %v935_v46, %s1799_s24  ;;  %s1811_s24 = smov 95   ;;  %s1812_s26 = smov 107  }
 0x285   : > { %1057 = vrot.lane.b32.xlu0 %v935_v46, %s1806_s10  ;;  %1076 = vrot.lane.b32.xlu1 %v935_v46, %s1803_s28  ;;  %s1813_s10 = smov 105  }
 0x289   : > { %1093 = vrot.lane.b32.xlu0 %v930_v42, %s1808_s13  ;;  %1091 = vrot.lane.b32.xlu1 %v933_v40, %s1808_s13 }
 0x28d   : > { %1225 = vperm.xlu0 %1776, %v1222_v47   ;;  %1095 = vrot.lane.b32.xlu1 %v935_v46, %s1808_s13  ;;  %s1815_s13 = smov 101  }
 0x291   : > { %1380 = vperm.xlu1 %1775, %v1377_v48  }
 0x29b   : > { %v951_v49 = vpop.permute.xlu1 %950  ;;  %v989_v50 = vpop.permute.xlu0 %988 }
 0x29f   : > { %v970_v51 = vpop.permute.xlu1 %969  ;;  %v1027_v52 = vpop.permute.xlu0 %1026 }
 0x2a3   : > { %v1008_v54 = vpop.permute.xlu1 %1007  ;;  %v1065_v55 = vpop.permute.xlu0 %1064 }
 0x2a7   : > { %v1046_v56 = vpop.permute.xlu1 %1045  ;;  %v1084_v57 = vpop.permute.xlu0 %1083 }
 0x2ab   : > { %v953_v59 = vpop.permute.xlu1 %952  ;;  %v991_v60 = vpop.permute.xlu0 %990 }
 0x2ac   : > { %v956_v3 = vsel %vm397_vm0, %v951_v49, %v953_v59  ;;  %v994_v26 = vsel %vm439_vm4, %v989_v50, %v991_v60 }
 0x2ad   : > { %v1103_v6 = vrot.slane %v956_v3, 4  ;;  %v1110_v36 = vrot.slane %v994_v26, 4 }
 0x2af   : > { %v972_v63 = vpop.permute.xlu1 %971  ;;  %v1029_v0 = vpop.permute.xlu0 %1028  ;;  %v1131_v13 = vsel %vm587_vm2, %v2146_v16, %v1103_v6 }
 0x2b0   : > { %v975_v18 = vsel %vm418_vm5, %v970_v51, %v972_v63  ;;  %v1032_v53 = vsel %vm481_vm8, %v1027_v52, %v1029_v0 }
 0x2b1   : > { %v1154_v62 = vsel %vm587_vm2, %v975_v18, %v1110_v36  ;;  %v1117_v16 = vrot.slane %v1032_v53, 4 }
 0x2b3   : > { %v1010_v1 = vpop.permute.xlu1 %1009  ;;  %v1067_v2 = vpop.permute.xlu0 %1066 }
 0x2b7   : > { %v1048_v4 = vpop.permute.xlu1 %1047  ;;  %v2242_v5 = vpop.permute.xlu0 %954 }
 0x2b8   : > { %v957_v8 = vsel %vm397_vm0, %v953_v59, %v2242_v5  ;;  %vm2489_vm0 = vcmask 891904   ;;  %v1051_v40 = vsel %vm2493_vm13, %v1046_v56, %v1048_v4 }
 0x2b9   : > { %v1104_v10 = vrot.slane %v957_v8, 4  ;;  %v1013_v30 = vsel %vm2489_vm0, %v1008_v54, %v1010_v1 }
 0x2ba   : > { %v1177_v39 = vsel %vm587_vm2, %v1013_v30, %v1117_v16 }
 0x2bb   : > { %v1086_v11 = vpop.permute.xlu1 %1085  ;;  %v2246_v19 = vpop.permute.xlu0 %973  ;;  %v1135_v12 = vsel %vm587_vm2, %v2165_v34, %v1104_v10 }
 0x2bc   : > { %1248 = vmatprep.subr.bf16.mxu1 %v1135_v12  ;;  %v976_v23 = vsel %vm418_vm5, %v972_v63, %v2246_v19  ;;  %vm2491_vm5 = vcmask 744448   ;;  %v1089_v50 = vsel %vm544_vm12, %v1084_v57, %v1086_v11 }
 0x2bd   : > { %1249 = vmatpush1.bf16.msra.mxu1 %v1131_v13  ;;  %v1070_v33 = vsel %vm2491_vm5, %v1065_v55, %v1067_v2  ;;  %v1232_v54 = vsel %vm587_vm2, %v1089_v50, 0  ;;  %v2296_v55 = vld [vmem:[%s2470_s4] sm:$0xf] }
 0x2be   : > { %v1124_v42 = vrot.slane %v1070_v33, 4 }
 0x2bf   : > { %v2253_v14 = vpop.permute.xlu1 %992  ;;  %v2255_v15 = vpop.permute.xlu0 %1011 }
 0x2c0   : > { %v995_v17 = vsel %vm439_vm4, %v991_v60, %v2253_v14  ;;  %vm2490_vm4 = vmmov %vm2489_vm0  ;;  %v1200_v49 = vsel %vm587_vm2, %v1051_v40, %v1124_v42  ;;  %vm2501_vm0 = vcmask 244736  }
 0x2c1   : > { %v1111_v21 = vrot.slane %v995_v17, 4  ;;  %v1014_v32 = vsel %vm2490_vm4, %v1010_v1, %v2255_v15  ;;  %vm2502_vm4 = vmmov %vm2501_vm0 }
 0x2c3   : > { %v2263_v24 = vpop.permute.xlu1 %1030  ;;  %v2265_v25 = vpop.permute.xlu0 %1049  ;;  %v1158_v28 = vsel %vm587_vm2, %v976_v23, %v1111_v21 }
 0x2c4   : > { %v1033_v29 = vsel %vm481_vm8, %v1029_v0, %v2263_v24  ;;  %1250 = vmatprep.subr.bf16.mxu1 %v1158_v28  ;;  %vm2492_vm8 = vmmov %vm2491_vm5  ;;  %v1052_v43 = vsel %vm2494_vm14, %v1048_v4, %v2265_v25 }
 0x2c5   : > { %v1118_v31 = vrot.slane %v1033_v29, 4  ;;  %1251 = vmatpush1.bf16.msra.mxu1 %v1154_v62 }
 0x2c7   : > { %v2275_v27 = vpop.permute.xlu1 %1068  ;;  %v959_v34 = vpop.permute.xlu0 %958  ;;  %v1181_v35 = vsel %vm587_vm2, %v1014_v32, %v1118_v31 }
 0x2c8   : > { %v1071_v38 = vsel %vm2492_vm8, %v1067_v2, %v2275_v27  ;;  %1252 = vmatprep.subr.bf16.mxu1 %v1181_v35  ;;  %v968_v6 = vsel %vm384_vm3, %v2242_v5, %v959_v34 }
 0x2c9   : > { %v1125_v41 = vrot.slane %v1071_v38, 4  ;;  %1253 = vmatpush1.bf16.msra.mxu1 %v1177_v39  ;;  %v1105_v26 = vrot.slane %v968_v6, 4 }
 0x2cb   : > { %v939_v45 = vpop.permute.xlu1 %938  ;;  %v2284_v46 = vpop.permute.xlu0 %1087  ;;  %v1204_v47 = vsel %vm587_vm2, %v1052_v43, %v1125_v41 }
 0x2cc   : > { %v1090_v48 = vsel %vm544_vm12, %v1086_v11, %v2284_v46  ;;  %1254 = vmatprep.subr.bf16.mxu1 %v1204_v47  ;;  %v947_v12 = vsel %vm384_vm3, %v2181_v37, %v939_v45  ;;  %vm2495_vm12 = vcmask 400384  }
 0x2cd   : > { %1255 = vmatpush1.bf16.msra.mxu1 %v1200_v49  ;;  %v1138_v37 = vsel %vm587_vm2, %v947_v12, %v1105_v26 }
 0x2ce   : > { %1706 = vmatprep.subr.msk.bf16.mxu1 %vm587_vm2, %v1090_v48 }
 0x2cf   : > { %v997_v51 = vpop.permute.xlu1 %996  ;;  %v941_v52 = vpop.permute.xlu0 %940 }
 0x2d0   : > { %v944_v17 = vsel %vm384_vm3, %v939_v45, %v941_v52  ;;  %v1006_v21 = vsel %vm384_vm3, %v2253_v14, %v997_v51 }
 0x2d1   : > { %1257 = vmatpush1.bf16.msra.mxu1 %v1232_v54  ;;  %v1112_v16 = vrot.slane %v1006_v21, 4 }
 0x2d3   : > { %v978_v56 = vpop.permute.xlu1 %977  ;;  %v999_v59 = vpop.permute.xlu0 %998 }
 0x2d4   : > { %1707 = vmatmul.mubr.msk.bf16.vlgmr.msra.gmra.mrb[4].mxu1 %vm687_vm9, %v2296_v55  ;;  %v1002_v11 = vsel %vm448_vm6, %v997_v51, %v999_v59  ;;  %v987_v30 = vsel %vm384_vm3, %v2246_v19, %v978_v56 }
 0x2d5   : > { %1362 = vmatprep.mubr.bf16.mxu1 %v1805_v7  ;;  %v1113_v5 = vrot.slane %v1002_v11, 4  ;;  %v1161_v45 = vsel %vm587_vm2, %v987_v30, %v1112_v16 }
 0x2d7   : > { %v1035_v57 = vpop.permute.xlu1 %1034  ;;  %v980_v60 = vpop.permute.xlu0 %979 }
 0x2d8   : > { %v983_v18 = vsel %vm427_vm7, %v978_v56, %v980_v60  ;;  %v1044_v35 = vsel %vm384_vm3, %v2263_v24, %v1035_v57 }
 0x2d9   : > { %v1165_v14 = vsel %vm587_vm2, %v983_v18, %v1113_v5  ;;  %v1119_v49 = vrot.slane %v1044_v35, 4 }
 0x2db   : > { %v1016_v63 = vpop.permute.xlu1 %1015  ;;  %v1037_v0 = vpop.permute.xlu0 %1036 }
 0x2dc   : > { %v1040_v28 = vsel %vm490_vm10, %v1035_v57, %v1037_v0  ;;  %v1025_v47 = vsel %vm384_vm3, %v2255_v15, %v1016_v63 }
 0x2dd   : > { %v1120_v38 = vrot.slane %v1040_v28, 4 }
 0x2df   : > { %v1073_v1 = vpop.permute.xlu1 %1072  ;;  %v2301_v2 = vpop.permute.xlu0 %1017 }
 0x2e0   : > { %v1021_v32 = vsel %vm2495_vm12, %v1016_v63, %v2301_v2  ;;  %v1082_v54 = vsel %vm384_vm3, %v2275_v27, %v1073_v1 }
 0x2e1   : > { %v1188_v24 = vsel %vm587_vm2, %v1021_v32, %v1120_v38  ;;  %v1126_v27 = vrot.slane %v1082_v54, 4 }
 0x2e3   : > { %v1054_v3 = vpop.permute.xlu1 %1053  ;;  %v2303_v4 = vpop.permute.xlu0 %1074 }
 0x2e7   : > { %v961_v8 = vpop.permute.xlu1 %960  ;;  %v2307_v10 = vpop.permute.xlu0 %1055 }
 0x2e8   : > { %v964_v7 = vsel %vm406_vm1, %v959_v34, %v961_v8  ;;  %v1059_v50 = vsel %vm2497_vm15, %v1054_v3, %v2307_v10  ;;  %vm2503_vm15 = vmmov %vm2500_vm11 }
 0x2e9   : > { %v1106_v13 = vrot.slane %v964_v7, 4 }
 0x2eb   : > { %v963_v36 = vpop.permute.xlu1 %962  ;;  %v943_v23 = vpop.permute.xlu0 %942  ;;  %v1142_v53 = vsel %vm587_vm2, %v944_v17, %v1106_v13 }
 0x2ec   : > { %v965_v29 = vsel %vm406_vm1, %v961_v8, %v963_v36  ;;  %v1108_v62 = vrot.slane %v963_v36, 4  ;;  %1289 = vmatprep.subr.bf16.mxu0 %v1142_v53  ;;  %v945_v33 = vsel %vm384_vm3, %v941_v52, %v943_v23  ;;  %vm2496_vm1 = vcmask 252928  }
 0x2ed   : > { %v1107_v31 = vrot.slane %v965_v29, 4  ;;  %1290 = vmatpush1.bf16.msra.mxu0 %v1138_v37  ;;  %v1078_v41 = vsel %vm2496_vm1, %v1073_v1, %v2303_v4  ;;  %v1184_v8 = vsel %vm587_vm2, %v1025_v47, %v1119_v49 }
 0x2ee   : > { %1291 = vmatprep.subr.bf16.mxu0 %v1165_v14  ;;  %v1150_v34 = vsel %vm587_vm2, %v943_v23, %v1108_v62  ;;  %v1127_v56 = vrot.slane %v1078_v41, 4 }
 0x2ef   : > { %v1001_v39 = vpop.permute.xlu1 %1000  ;;  %1330 = vmatprep.subr.bf16.mxu1 %v1150_v34  ;;  %v982_v19 = vpop.permute.xlu0 %981  ;;  %v1146_v40 = vsel %vm587_vm2, %v945_v33, %v1107_v31 }
 0x2f0   : > { %v1003_v42 = vsel %vm448_vm6, %v999_v59, %v1001_v39  ;;  %v1115_v43 = vrot.slane %v1001_v39, 4  ;;  %1331 = vmatpush1.bf16.msra.mxu1 %v1146_v40  ;;  %v984_v51 = vsel %vm427_vm7, %v980_v60, %v982_v19  ;;  %v1063_v60 = vsel %vm384_vm3, %v2265_v25, %v1054_v3  ;;  %vm2498_vm6 = vmmov %vm2495_vm12 }
 0x2f1   : > { %v1114_v48 = vrot.slane %v1003_v42, 4  ;;  %1292 = vmatpush1.bf16.msra.mxu0 %v1161_v45  ;;  %v1211_v7 = vsel %vm587_vm2, %v1059_v50, %v1127_v56  ;;  %vm2499_vm7 = vmmov %vm2496_vm1  ;;  %v1207_v3 = vsel %vm587_vm2, %v1063_v60, %v1126_v27  ;;  %vm1467_vm12 = vcmask 130048  }
 0x2f2   : > { %1293 = vmatprep.subr.bf16.mxu0 %v1188_v24  ;;  %v1173_v52 = vsel %vm587_vm2, %v982_v19, %v1115_v43  ;;  %vm1473_vm1 = vcmask 523264  }
 0x2f3   : > { %v1039_v59 = vpop.permute.xlu1 %1038  ;;  %1332 = vmatprep.subr.bf16.mxu1 %v1173_v52  ;;  %v1020_v15 = vpop.permute.xlu0 %1019  ;;  %v1169_v57 = vsel %vm587_vm2, %v984_v51, %v1114_v48 }
 0x2f4   : > { %v1041_v63 = vsel %vm490_vm10, %v1037_v0, %v1039_v59  ;;  %v1122_v6 = vrot.slane %v1039_v59, 4  ;;  %1333 = vmatpush1.bf16.msra.mxu1 %v1169_v57  ;;  %v1022_v1 = vsel %vm2498_vm6, %v2301_v2, %v1020_v15  ;;  %vm1475_vm6 = vcmask 654336  }
 0x2f5   : > { %v1121_v11 = vrot.slane %v1041_v63, 4  ;;  %1294 = vmatpush1.bf16.msra.mxu0 %v1184_v8 }
 0x2f6   : > { %1295 = vmatprep.subr.bf16.mxu0 %v1211_v7  ;;  %v1196_v12 = vsel %vm587_vm2, %v1020_v15, %v1122_v6 }
 0x2f7   : > { %v1077_v13 = vpop.permute.xlu1 %1076  ;;  %1334 = vmatprep.subr.bf16.mxu1 %v1196_v12  ;;  %v1058_v0 = vpop.permute.xlu0 %1057  ;;  %v1192_v26 = vsel %vm587_vm2, %v1022_v1, %v1121_v11 }
 0x2f8   : > { %v1079_v17 = vsel %vm2499_vm7, %v2303_v4, %v1077_v13  ;;  %v1129_v25 = vrot.slane %v1077_v13, 4  ;;  %1335 = vmatpush1.bf16.msra.mxu1 %v1192_v26  ;;  %v1060_v2 = vsel %vm2500_vm11, %v2307_v10, %v1058_v0  ;;  %vm1432_vm7 = vcmask 793600  }
 0x2f9   : > { %v1128_v18 = vrot.slane %v1079_v17, 4  ;;  %1296 = vmatpush1.bf16.msra.mxu0 %v1207_v3  ;;  %vm1477_vm11 = vcmask 785408  }
 0x2fa   : > { %v1219_v21 = vsel %vm587_vm2, %v1058_v0, %v1129_v25 }
 0x2fb   : > { %v1092_v5 = vpop.permute.xlu1 %1091  ;;  %1336 = vmatprep.subr.bf16.mxu1 %v1219_v21  ;;  %v1094_v36 = vpop.permute.xlu0 %1093  ;;  %v1215_v23 = vsel %vm587_vm2, %v1060_v2, %v1128_v18 }
 0x2fc   : > { %v1101_v53 = vsel %vm384_vm3, %v2284_v46, %v1092_v5  ;;  %v1097_v4 = vsel %vm2501_vm0, %v1092_v5, %v1094_v36  ;;  %1337 = vmatpush1.bf16.msra.mxu1 %v1215_v23  ;;  %vm1479_vm0 = vcmask 916480  }
 0x2fd   : > { %v1237_v28 = vsel %vm587_vm2, %v1101_v53, 0  ;;  %1708 = vmatprep.subr.msk.bf16.mxu0 %vm587_vm2, %v1097_v4 }
 0x2fe   : > { %1298 = vmatpush1.bf16.msra.mxu0 %v1237_v28 }
 0x2ff   : > { %v1096_v29 = vpop.permute.xlu1 %1095 }
 0x300   : > { %v1098_v10 = vsel %vm2502_vm4, %v1094_v36, %v1096_v29  ;;  %1710 = vmatprep.subr.msk.bf16.mxu1 %vm587_vm2, %v1096_v29  ;;  %vm1501_vm4 = vcmask 490496  }
 0x301   : > { %v1243_v62 = vsel %vm587_vm2, %v1098_v10, 0  ;;  %1709 = vmatmul.mubr.msk.bf16.vlgmr.msra.gmra.mrb[8].mxu0 %vm687_vm9, %v2296_v55 }
 0x302   : > { %1339 = vmatpush1.bf16.msra.mxu1 %v1243_v62 }
 0x305   : > { %1711 = vmatmul.mubr.msk.bf16.vlgmr.msra.gmra.mrb[8].mxu1 %vm687_vm9, %v2296_v55 }
 0x30c   : > { %v1226_v46 = vpop.permute.xlu0 %1225 }
 0x310   : > { %v1381_v14 = vpop.permute.xlu1 %1380 }
 0x3a7   : > { %v1282_v37 = vpop.f32.mrb[4].mxu1 }
 0x3a8   : > { %v1283_v30 = vadd.f32 %v1282_v37, %v1226_v46  ;;  %v1284_v31 = vpop.f32.mrb[5].mxu1 }
 0x3a9   : > { %v1285_v16 = vadd.f32 %v1284_v31, %v1226_v46  ;;  %v1286_v32 = vpop.f32.mrb[6].mxu1 }
 0x3aa   : > { %vm1371_vm5 = vcmp.gt.f32.partialorder %v1283_v30, 0.0  ;;  %v1383_v33 = vmul.f32 %v1381_v14, %v1283_v30  ;;  %v1287_v34 = vpop.f32.mrb[7].mxu1 }
 0x3ab   : > { %vm1372_vm8 = vcmp.gt.f32.partialorder %v1285_v16, 0.0  ;;  %v1384_v35 = vmul.f32 %v1381_v14, %v1285_v16 }
 0x3ac   : > { %v1389_v38 = vsel %vm1371_vm5, %v1283_v30, %v1383_v33  ;;  %vm1550_vm5 = vcmask 187392  }
 0x3ad   : > { %v1395_v39 = vmul.f32 %v1389_v38, %v2120_v44  ;;  %v1390_v19 = vsel %vm1372_vm8, %v1285_v16, %v1384_v35  ;;  %vm1525_vm8 = vcmask 302080  }
 0x3ae   : > { %v2375_v40 = vmul.f32 %v1390_v19, %v2130_v9 }
 0x3af   : > { %1409 = vrot.lane.b32.xlu1 %v1395_v39, %s1800_s25  ;;  %s1819_s25 = smov 89  }
 0x3b0   : > { %1435 = vrot.lane.b32.xlu0 %v2375_v40, %s1811_s24  ;;  %v1401_v63 = vadd.f32 %v2375_v40, %v1395_v39  ;;  %s1827_s24 = smov 37  }
 0x3b3   : > { %1412 = vrot.lane.b32.xlu1 %v1395_v39, %s1812_s26  ;;  %s1828_s26 = smov 13  }
 0x3b7   : > { %1415 = vrot.lane.b32.xlu1 %v1395_v39, %s1813_s10  ;;  %s1829_s10 = smov 25  }
 0x3bb   : > { %1418 = vrot.lane.b32.xlu1 %v1395_v39, %s1814_s12  ;;  %s1830_s12 = smov 21  }
 0x3bf   : > { %1421 = vrot.lane.b32.xlu1 %v1395_v39, %s1815_s13  ;;  %s1831_s13 = smov 83  }
 0x3c3   : > { %1424 = vrot.lane.b32.xlu1 %v1395_v39, %s1816_s15  ;;  %s1834_s15 = smov 81  }
 0x3c7   : > { %1428 = vrot.lane.b32.xlu1 %v1395_v39, %s1817_s14 }
 0x3cb   : > { %1430 = vrot.lane.b32.xlu1 %v2375_v40, %s1817_s14  ;;  %s1835_s14 = smov 15  }
 0x3cf   : > { %1438 = vrot.lane.b32.xlu1 %v2375_v40, %s1818_s16  ;;  %s1836_s16 = smov 29  }
 0x3d3   : > { %1441 = vrot.lane.b32.xlu1 %v2375_v40, %s1802_s27  ;;  %s1820_s27 = smov 60  }
 0x3d4   : > { %v1323_v44 = vpop.f32.mrb[8].mxu0 }
 0x3d5   : > { %v1324_v9 = vadd.f32 %v1323_v44, %v1226_v46  ;;  %v1325_v55 = vpop.f32.mrb[9].mxu0 }
 0x3d6   : > { %v1326_v41 = vadd.f32 %v1325_v55, %v1226_v46  ;;  %v1327_v42 = vpop.f32.mrb[10].mxu0 }
 0x3d7   : > { %vm1373_vm2 = vcmp.gt.f32.partialorder %v1324_v9, 0.0  ;;  %v1385_v43 = vmul.f32 %v1381_v14, %v1324_v9  ;;  %v1328_v45 = vpop.f32.mrb[11].mxu0  ;;  %1444 = vrot.lane.b32.xlu1 %v2375_v40, %s1819_s25 }
 0x3d8   : > { %vm1374_vm9 = vcmp.gt.f32.partialorder %v1326_v41, 0.0  ;;  %v1386_v47 = vmul.f32 %v1381_v14, %v1326_v41  ;;  %v1364_v48 = vpop.f32.mrb[8].mxu1 }
 0x3d9   : > { %v1391_v24 = vsel %vm1373_vm2, %v1324_v9, %v1385_v43  ;;  %v1365_v49 = vadd.f32 %v1364_v48, %v1226_v46  ;;  %v1366_v50 = vpop.f32.mrb[9].mxu1 }
 0x3da   : > { %v1397_v51 = vmul.f32 %v1391_v24, %v2123_v58  ;;  %v1392_v52 = vsel %vm1374_vm9, %v1326_v41, %v1386_v47  ;;  %v1367_v54 = vadd.f32 %v1366_v50, %v1226_v46  ;;  %v1368_v56 = vpop.f32.mrb[10].mxu1  ;;  %vm1458_vm9 = vcmask 678912  }
 0x3db   : > { %v2386_v59 = vmul.f32 %v1392_v52, %v2125_v61  ;;  %vm1375_vm13 = vcmp.gt.f32.partialorder %v1365_v49, 0.0  ;;  %v1387_v15 = vmul.f32 %v1381_v14, %v1365_v49  ;;  %v1369_v57 = vpop.f32.mrb[11].mxu1 }
 0x3dc   : > { %vm1376_vm14 = vcmp.gt.f32.partialorder %v1367_v54, 0.0  ;;  %v1388_v6 = vmul.f32 %v1381_v14, %v1367_v54  ;;  %1493 = vrot.lane.b32.xlu0 %v1397_v51, %s1820_s27  ;;  %v1402_v8 = vsel %vm384_vm3, %v1397_v51, 0.0 }
 0x3dd   : > { %v1393_v60 = vsel %vm1375_vm13, %v1365_v49, %v1387_v15  ;;  %1495 = vrot.lane.b32.xlu1 %v2386_v59, %s1820_s27  ;;  %v2391_v58 = vadd.f32 %v1402_v8, %v1401_v63 }
 0x3de   : > { %v2394_v11 = vmul.f32 %v1393_v60, %v2137_v20  ;;  %v1394_v61 = vsel %vm1376_vm14, %v1367_v54, %v1388_v6 }
 0x3df   : > { %v1400_v7 = vmul.f32 %v1394_v61, %v2139_v22 }
 0x3e0   : > { %1497 = vrot.lane.b32.xlu0 %v2394_v11, %s1820_s27 }
 0x3e1   : > { %1499 = vrot.lane.b32.xlu1 %v1400_v7, %s1820_s27 }
 0x3e4   : > { %1546 = vrot.lane.b32.xlu0 %v2386_v59, %s1821_s19 }
 0x3e5   : > { %1447 = vrot.lane.b32.xlu1 %v2375_v40, %s1822_s21  ;;  %s1837_s21 = smov 27  }
 0x3e8   : > { %1548 = vrot.lane.b32.xlu0 %v2394_v11, %s1821_s19 }
 0x3e9   : > { %1450 = vrot.lane.b32.xlu1 %v2375_v40, %s1823_s17  ;;  %s1838_s17 = smov 11  }
 0x3ec   : > { %1515 = vrot.lane.b32.xlu0 %v1397_v51, %s1824_s20  ;;  %s1691_s20 = sshll.u32 %s2508_s11, 3 }
 0x3ed   : > { %1559 = vrot.lane.b32.xlu1 %v2394_v11, %s1825_s22 }
 0x3f0   : > { %1518 = vrot.lane.b32.xlu0 %v1397_v51, %s1826_s23 }
 0x3f1   : > { %1534 = vrot.lane.b32.xlu1 %v2386_v59, %s1803_s28  ;;  %s1832_s28 = smov 35  }
 0x3f4   : > { %1521 = vrot.lane.b32.xlu0 %v1397_v51, %s1827_s24 }
 0x3f5   : > { %1464 = vrot.lane.b32.xlu1 %v1397_v51, %s1810_s29  ;;  %s1833_s29 = smov 33  }
 0x3f8   : > { %1523 = vrot.lane.b32.xlu0 %v2386_v59, %s1827_s24  ;;  %s353_s24 = scalar_lea.vmem %s2475_s9, %s1691_s20 }
 0x3f9   : > { %1565 = vrot.lane.b32.xlu1 %v2394_v11, %s1828_s26 }
 0x3fc   : > { %1543 = vrot.lane.b32.xlu0 %v2386_v59, %s1829_s10 }
 0x400   : > { %1553 = vrot.lane.b32.xlu0 %v2394_v11, %s1830_s12 }
 0x404   : > { %1454 = vrot.lane.b32.xlu0 %v2375_v40, %s1831_s13 }
 0x408   : > { %1456 = vrot.lane.b32.xlu0 %v1397_v51, %s1831_s13 }
 0x40c   : > { %1528 = vrot.lane.b32.xlu0 %v2386_v59, %s1832_s28 }
 0x410   : > { %1556 = vrot.lane.b32.xlu0 %v2394_v11, %s1809_s18  ;;  %s1717_s18 = sshll.u32 %s2508_s11, 4 }
 0x411   : > { %s2426_s19 = scalar_lea.vmem %s2474_s8, %s1717_s18 }
 0x414   : > { %1531 = vrot.lane.b32.xlu0 %v2386_v59, %s1833_s29 }
 0x418   : > { %1461 = vrot.lane.b32.xlu0 %v1397_v51, %s1834_s15 }
 0x41c   : > { %1562 = vrot.lane.b32.xlu0 %v2394_v11, %s1835_s14 }
 0x420   : > { %1537 = vrot.lane.b32.xlu0 %v2386_v59, %s1836_s16 }
 0x421   : > { %v1410_v20 = vpop.permute.xlu1 %1409 }
 0x422   : > { %v1436_v5 = vpop.permute.xlu0 %1435 }
 0x425   : > { %v1413_v22 = vpop.permute.xlu1 %1412 }
 0x426   : > { %v1468_v26 = vsel %vm1467_vm12, %v1410_v20, %v1413_v22 }
 0x429   : > { %v1416_v27 = vpop.permute.xlu1 %1415 }
 0x42a   : > { %v1470_v17 = vsel %vm2503_vm15, %v1468_v26, %v1416_v27 }
 0x42d   : > { %v1419_v1 = vpop.permute.xlu1 %1418 }
 0x42e   : > { %v1472_v25 = vsel %vm490_vm10, %v1470_v17, %v1419_v1 }
 0x431   : > { %v1422_v12 = vpop.permute.xlu1 %1421 }
 0x432   : > { %v1474_v3 = vsel %vm1473_vm1, %v1472_v25, %v1422_v12 }
 0x435   : > { %v1425_v13 = vpop.permute.xlu1 %1424 }
 0x436   : > { %v1476_v2 = vsel %vm1475_vm6, %v1474_v3, %v1425_v13 }
 0x439   : > { %v1429_v0 = vpop.permute.xlu1 %1428 }
 0x43d   : > { %v1431_v18 = vpop.permute.xlu1 %1430 }
 0x43e   : > { %v1433_v21 = vsel %vm1432_vm7, %v1429_v0, %v1431_v18 }
 0x43f   : > { %v1478_v36 = vsel %vm1477_vm11, %v1476_v2, %v1433_v21  ;;  %1404 = vadd.xlane.f32.xlu0 %v2391_v58 }
 0x440   : > { %v1480_v23 = vsel %vm1479_vm0, %v1478_v36, %v1436_v5 }
 0x441   : > { %v1439_v53 = vpop.permute.xlu1 %1438  ;;  %1488 = vst [vmem:[%s2426_s19] sm:$0xff] %v1480_v23 }
 0x445   : > { %v1442_v4 = vpop.permute.xlu1 %1441 }
 0x446   : > { %v1481_v57 = vsel %vm1467_vm12, %v1439_v53, %v1442_v4 }
 0x449   : > { %v1445_v28 = vpop.permute.xlu1 %1444 }
 0x44e   : > { %v1494_v29 = vpop.permute.xlu0 %1493 }
 0x44f   : > { %v1496_v10 = vpop.permute.xlu1 %1495 }
 0x450   : > { %v1502_v46 = vsel %vm1501_vm4, %v1494_v29, %v1496_v10 }
 0x452   : > { %v1498_v62 = vpop.permute.xlu0 %1497 }
 0x453   : > { %v1503_v37 = vsel %vm1501_vm4, %v1496_v10, %v1498_v62  ;;  %v1500_v30 = vpop.permute.xlu1 %1499 }
 0x454   : > { %v1508_v31 = vadd.f32 %v1503_v37, %v1502_v46  ;;  %v1504_v14 = vsel %vm1501_vm4, %v1498_v62, %v1500_v30 }
 0x455   : > { %v1509_v16 = vsel %vm384_vm3, %v1504_v14, 0.0  ;;  %1540 = vrot.lane.b32.xlu0 %v2386_v59, %s1837_s21  ;;  %vm2504_vm3 = vmmov %vm2503_vm15 }
 0x456   : > { %v1510_v32 = vadd.f32 %v1509_v16, %v1508_v31  ;;  %v1547_v33 = vpop.permute.xlu0 %1546  ;;  %vm2505_vm2 = vmmov %vm2504_vm3 }
 0x457   : > { %v1448_v45 = vpop.permute.xlu1 %1447  ;;  %vm2506_vm13 = vmmov %vm2505_vm2 }
 0x458   : > { %1511 = vadd.xlane.f32.xlu1 %v1510_v32  ;;  %v1482_v6 = vsel %vm2506_vm13, %v1481_v57, %v1445_v28 }
 0x459   : > { %v1483_v58 = vsel %vm490_vm10, %v1482_v6, %v1448_v45 }
 0x45a   : > { %v1549_v34 = vpop.permute.xlu0 %1548 }
 0x45b   : > { %v1551_v35 = vsel %vm1550_vm5, %v1547_v33, %v1549_v34  ;;  %v1451_v24 = vpop.permute.xlu1 %1450 }
 0x45c   : > { %v1484_v61 = vsel %vm1473_vm1, %v1483_v58, %v1451_v24 }
 0x45e   : > { %v1516_v38 = vpop.permute.xlu0 %1515 }
 0x45f   : > { %v1560_v51 = vpop.permute.xlu1 %1559 }
 0x462   : > { %v1519_v39 = vpop.permute.xlu0 %1518 }
 0x463   : > { %v1571_v19 = vsel %vm1467_vm12, %v1516_v38, %v1519_v39  ;;  %v1535_v15 = vpop.permute.xlu1 %1534 }
 0x466   : > { %v1522_v40 = vpop.permute.xlu0 %1521 }
 0x467   : > { %v1465_v22 = vpop.permute.xlu1 %1464 }
 0x469   : > { %1568 = vrot.lane.b32.xlu1 %v2394_v11, %s1838_s17 }
 0x46a   : > { %v1524_v44 = vpop.permute.xlu0 %1523 }
 0x46b   : > { %v1526_v9 = vsel %vm1525_vm8, %v1522_v40, %v1524_v44  ;;  %v1566_v3 = vpop.permute.xlu1 %1565 }
 0x46c   : > { %v1572_v55 = vsel %vm2504_vm3, %v1571_v19, %v1526_v9 }
 0x46e   : > { %v1544_v41 = vpop.permute.xlu0 %1543 }
 0x46f   : > { %v1578_v42 = vsel %vm1467_vm12, %v1544_v41, %v1551_v35 }
 0x472   : > { %v1554_v43 = vpop.permute.xlu0 %1553 }
 0x473   : > { %v1579_v47 = vsel %vm2505_vm2, %v1578_v42, %v1554_v43 }
 0x476   : > { %v1455_v48 = vpop.permute.xlu0 %1454 }
 0x47a   : > { %v1457_v49 = vpop.permute.xlu0 %1456 }
 0x47b   : > { %v1459_v8 = vsel %vm1458_vm9, %v1455_v48, %v1457_v49 }
 0x47c   : > { %v1485_v20 = vsel %vm1475_vm6, %v1484_v61, %v1459_v8 }
 0x47e   : > { %v1529_v50 = vpop.permute.xlu0 %1528 }
 0x47f   : > { %v1573_v52 = vsel %vm490_vm10, %v1572_v55, %v1529_v50 }
 0x482   : > { %v1557_v54 = vpop.permute.xlu0 %1556 }
 0x483   : > { %v1580_v56 = vsel %vm490_vm10, %v1579_v47, %v1557_v54  ;;  %vm1406_vm10 = vcmask 7168  }
 0x484   : > { %v1581_v59 = vsel %vm1473_vm1, %v1580_v56, %v1560_v51 }
 0x486   : > { %v1532_v63 = vpop.permute.xlu0 %1531 }
 0x487   : > { %v1574_v60 = vsel %vm1473_vm1, %v1573_v52, %v1532_v63 }
 0x488   : > { %v1575_v11 = vsel %vm1475_vm6, %v1574_v60, %v1535_v15 }
 0x48a   : > { %v1462_v7 = vpop.permute.xlu0 %1461 }
 0x48b   : > { %v1486_v27 = vsel %vm1477_vm11, %v1485_v20, %v1462_v7 }
 0x48c   : > { %v1487_v1 = vsel %vm1479_vm0, %v1486_v27, %v1465_v22 }
 0x48d   : > { %1489 = vst [vmem:[%s2426_s19 + $0x8] sm:$0xff] %v1487_v1 }
 0x48e   : > { %v1563_v12 = vpop.permute.xlu0 %1562 }
 0x48f   : > { %v1582_v2 = vsel %vm1475_vm6, %v1581_v59, %v1563_v12 }
 0x490   : > { %v1583_v21 = vsel %vm1477_vm11, %v1582_v2, %v1566_v3 }
 0x492   : > { %v1538_v13 = vpop.permute.xlu0 %1537 }
 0x493   : > { %v1576_v26 = vsel %vm1477_vm11, %v1575_v11, %v1538_v13 }
 0x4cc   : > { %v1405_v0 = vpop.xlane.xlu0 %1404 }
 0x4cd   : > { %1407 = vst.msk [vmem:[%s353_s24] sm:$0xff] %vm1406_vm10, %v1405_v0 }
 0x4d0   : > { %v1541_v17 = vpop.permute.xlu0 %1540 }
 0x4d1   : > { %v1577_v25 = vsel %vm1479_vm0, %v1576_v26, %v1541_v17 }
 0x4d2   : > { %1713 = vst [vmem:[%s2426_s19 + $0x10] sm:$0xff] %v1577_v25 }
 0x4e5   : > { %v1512_v18 = vpop.xlane.xlu1 %1511 }
 0x4e6   : > { %1712 = vst.msk [vmem:[%s353_s24 + $0x8] sm:$0xff] %vm1406_vm10, %v1512_v18 }
 0x4e9   : > { %v1569_v5 = vpop.permute.xlu1 %1568 }
 0x4ea   : > { %v1584_v36 = vsel %vm1479_vm0, %v1583_v21, %v1569_v5 }
 0x4eb   : > { %1714 = vst [vmem:[%s2426_s19 + $0x18] sm:$0xff] %v1584_v36 }
 0x4ec PF: > { %s20_s30 = sadd.s32 1, %s1789_s30  }
 0x4ed   : > { %p17_p4 = scmp.ge.s32.totalorder %s20_s30, 4  }
 0x4ef   :  { %19 = sbr.rel (!%p17_p4) target bundleno = 1 (0x1), region = 97 }

</bundles_post_ra>
